<compile_context>
chip_gen: v7x
topology: tpu7x:2x2x1
jax: 0.10.0
libtpu: 0.0.40
codegen_flags: <defaults>
</compile_context>

<pallas_src>
import math

import jax
import jax.numpy as jnp
from jax.experimental import pallas as pl
from jax.experimental.pallas import tpu as pltpu


# ------------------------- Pallas kernel -------------------------

def seq_res_block_kernel(x_ref, wa_ref, ba_ref, wb_ref, bb_ref, o_ref):
    f32 = jnp.float32
    mm_dtype = wa_ref.dtype                          # bf16 weights -> bf16 MXU operands
    n_res = wa_ref.shape[0]

    def res_block(r, z):
        t = jnp.maximum(z, 0.0).astype(mm_dtype)
        t = jnp.dot(t, wa_ref[r], preferred_element_type=f32) + ba_ref[r]
        t = jnp.maximum(t, 0.0).astype(mm_dtype)
        t = jnp.dot(t, wb_ref[r], preferred_element_type=f32) + bb_ref[r]
        return z + t                                 # residual add (f32)

    z = x_ref[...].astype(f32)                       # (TB, layer)
    if n_res <= 8:
        for r in range(n_res):                       # static unroll for small n_res
            z = res_block(r, z)
    else:
        z = jax.lax.fori_loop(0, n_res, res_block, z)  # bounded live ranges for big n_res
    o_ref[...] = z.astype(o_ref.dtype)


# ------------------------- wrapper -------------------------

def _is_v7x():
    try:
        return "v7" in jax.devices()[0].device_kind.lower()
    except Exception:
        return False


def _auto_tb(B):
    if _is_v7x():
        tb = min(1024, -(-B // 2))   # >= 2 grid steps so both TensorCores get work
    else:
        tb = min(2048, B)            # single TC: one big block amortizes step overhead
    if tb < B:
        tb = max(8, (tb // 8) * 8)   # sublane-align partial tiles
    return tb


def seq_res_block_forward(x, params, *, tb=None):
    B, layer = x.shape
    wa, ba, wb, bb = params["wa"], params["ba"], params["wb"], params["bb"]
    n_res = wa.shape[0]

    # host-side prep: torch Linear weight is (out, in); pass (in, out) so the kernel
    # computes x @ W with no in-kernel transpose.  Weights go to bf16 (MXU operands),
    # biases stay f32 (added to the f32 accumulator).
    wa_t = jnp.transpose(wa, (0, 2, 1)).astype(jnp.bfloat16)
    wb_t = jnp.transpose(wb, (0, 2, 1)).astype(jnp.bfloat16)
    ba_r = ba.astype(jnp.float32).reshape(n_res, 1, layer)
    bb_r = bb.astype(jnp.float32).reshape(n_res, 1, layer)

    if tb is None:
        tb = _auto_tb(B)
    tb = min(tb, B)
    n_blocks = pl.cdiv(B, tb)
    b_pad = n_blocks * tb
    x_in = x if b_pad == B else jnp.pad(x, ((0, b_pad - B), (0, 0)))

    # VMEM budget: double-buffered x/out tiles + weights/biases (+ headroom).
    xo_bytes = 2 * 2 * tb * layer * 4
    w_bytes = 2 * (2 * n_res * layer * layer * 2 + 2 * n_res * layer * 4)
    vmem_limit = int(min(48 << 20, max(16 << 20, 2 * (xo_bytes + w_bytes))))

    cost = pl.CostEstimate(
        flops=4 * n_res * b_pad * layer * layer,
        transcendentals=0,
        bytes_accessed=(2 * b_pad * layer * 4            # x in + out
                        + 2 * n_res * layer * layer * 2  # bf16 weights
                        + 2 * n_res * layer * 4))        # f32 biases

    def build(single_buffer_weights):
        def const_spec(shape):
            idx = lambda i: (0,) * len(shape)
            if single_buffer_weights:
                # constant index_map -> second pipeline buffer is dead weight
                return pl.BlockSpec(shape, idx, pipeline_mode=pl.Buffered(1))
            return pl.BlockSpec(shape, idx)

        return pl.pallas_call(
            seq_res_block_kernel,
            out_shape=jax.ShapeDtypeStruct((b_pad, layer), jnp.float32),
            grid=(n_blocks,),
            in_specs=[
                pl.BlockSpec((tb, layer), lambda i: (i, 0)),   # x rows for this step
                const_spec((n_res, layer, layer)),             # Lin1 weights (pre-T, bf16)
                const_spec((n_res, 1, layer)),                 # Lin1 biases (f32)
                const_spec((n_res, layer, layer)),             # Lin2 weights (pre-T, bf16)
                const_spec((n_res, 1, layer)),                 # Lin2 biases (f32)
            ],
            out_specs=pl.BlockSpec((tb, layer), lambda i: (i, 0)),
            compiler_params=pltpu.CompilerParams(
                dimension_semantics=("parallel",),
                vmem_limit_bytes=vmem_limit),
            cost_estimate=cost,
        )

    try:
        out = build(True)(x_in, wa_t, ba_r, wb_t, bb_r)
    except Exception:
        # pl.Buffered(1) not supported on this jax version/backend -> default buffering.
        out = build(False)(x_in, wa_t, ba_r, wb_t, bb_r)

    return out if b_pad == B else out[:B]


# ------------------------- deterministic param init -------------------------

def init_params(key, n_res, layer):
    ks = jax.random.split(key, 4)
    bound = 1.0 / math.sqrt(float(layer))
    return {
        "wa": jax.random.uniform(ks[0], (n_res, layer, layer),
                                 minval=-bound, maxval=bound, dtype=jnp.float32),
        "ba": jax.random.uniform(ks[1], (n_res, layer),
                                 minval=-bound, maxval=bound, dtype=jnp.float32),
        "wb": jax.random.uniform(ks[2], (n_res, layer, layer),
                                 minval=-bound, maxval=bound, dtype=jnp.float32),
        "bb": jax.random.uniform(ks[3], (n_res, layer),
                                 minval=-bound, maxval=bound, dtype=jnp.float32),
    }


# ------------------------- pure-JAX references -------------------------

def reference_forward(x, p):
    # f32 reference matching the PyTorch module exactly.
    z = x.astype(jnp.float32)
    for r in range(p["wa"].shape[0]):
        t = jnp.maximum(z, 0.0) @ p["wa"][r].T + p["ba"][r]
        t = jnp.maximum(t, 0.0) @ p["wb"][r].T + p["bb"][r]
        z = z + t
    return z


def reference_forward_bf16(x, p):
    # Mirrors the kernel's bf16-operand / f32-accumulate matmuls.
    z = x.astype(jnp.float32)
    for r in range(p["wa"].shape[0]):
        wa = p["wa"][r].T.astype(jnp.bfloat16)
        wb = p["wb"][r].T.astype(jnp.bfloat16)
        t = jnp.dot(jnp.maximum(z, 0.0).astype(jnp.bfloat16), wa,
                    preferred_element_type=jnp.float32) + p["ba"][r]
        t = jnp.dot(jnp.maximum(t, 0.0).astype(jnp.bfloat16), wb,
                    preferred_element_type=jnp.float32) + p["bb"][r]
        z = z + t
    return z


# ------------------------- main -------------------------

if __name__ == "__main__":
    B, LAYER, N_RES = 256, 128, 2

    key = jax.random.PRNGKey(0)
    kx, kp = jax.random.split(key)
    x = jax.random.normal(kx, (B, LAYER), dtype=jnp.float32)
    params = init_params(kp, N_RES, LAYER)

    out = jax.block_until_ready(seq_res_block_forward(x, params))
    assert out.shape == (B, LAYER)
    assert bool(jnp.all(jnp.isfinite(out)))

    # Check 1: exact-ish match against a reference that mirrors the kernel's
    # bf16-in / f32-accumulate matmuls.
    ref_bf16 = jax.block_until_ready(reference_forward_bf16(x, params))
    err_bf16 = float(jnp.max(jnp.abs(out - ref_bf16)))
    assert jnp.allclose(out, ref_bf16, rtol=1e-3, atol=1e-3), (err_bf16,)

    # Check 2: semantics match against the f32 PyTorch-equivalent reference
    # (looser tolerance because the kernel uses bf16 matmul operands).
    ref_f32 = jax.block_until_ready(reference_forward(x, params))
    err_f32 = float(jnp.max(jnp.abs(out - ref_f32)))
    assert jnp.allclose(out, ref_f32, rtol=2e-2, atol=2e-2), (err_f32,)

    print("KERNEL_OK")
</pallas_src>

<mosaic_0001>
module attributes {stable_mosaic.version = 11 : i64} {
  func.func @seq_res_block_kernel(%arg0: i32, %arg1: memref<256x128xf32, #tpu.memory_space<vmem>>, %arg2: memref<2x128x128xbf16, #tpu.memory_space<vmem>>, %arg3: memref<2x1x128xf32, #tpu.memory_space<vmem>>, %arg4: memref<2x128x128xbf16, #tpu.memory_space<vmem>>, %arg5: memref<2x1x128xf32, #tpu.memory_space<vmem>>, %arg6: memref<256x128xf32, #tpu.memory_space<vmem>>) attributes {dimension_semantics = [#tpu.dimension_semantics<parallel>], iteration_bounds = array<i64: 1>, scalar_prefetch = 0 : i64, scratch_operands = 0 : i64, tpu.core_type = #tpu.core_type<tc>, window_params = [{transform_indices = @transform_0, window_bounds = array<i64: 256, 128>}, {pipeline_mode = #tpu.pipeline_mode<synchronous>, transform_indices = @transform_1, window_bounds = array<i64: 2, 128, 128>}, {pipeline_mode = #tpu.pipeline_mode<synchronous>, transform_indices = @transform_2, window_bounds = array<i64: 2, 1, 128>}, {pipeline_mode = #tpu.pipeline_mode<synchronous>, transform_indices = @transform_3, window_bounds = array<i64: 2, 128, 128>}, {pipeline_mode = #tpu.pipeline_mode<synchronous>, transform_indices = @transform_4, window_bounds = array<i64: 2, 1, 128>}, {transform_indices = @transform_5, window_bounds = array<i64: 256, 128>}]} {
    %c0 = arith.constant 0 : index
    %c0_0 = arith.constant 0 : index
    %0 = vector.load %arg1[%c0, %c0_0] : memref<256x128xf32, #tpu.memory_space<vmem>>, vector<256x128xf32>
    %cst = arith.constant 0.000000e+00 : f32
    %1 = vector.broadcast %cst : f32 to vector<256x128xf32>
    %2 = arith.maximumf %0, %1 : vector<256x128xf32>
    %3 = arith.truncf %2 : vector<256x128xf32> to vector<256x128xbf16>
    %c0_1 = arith.constant 0 : index
    %c0_2 = arith.constant 0 : index
    %c0_3 = arith.constant 0 : index
    %4 = vector.load %arg2[%c0_1, %c0_2, %c0_3] : memref<2x128x128xbf16, #tpu.memory_space<vmem>>, vector<1x128x128xbf16>
    %5 = vector.shape_cast %4 : vector<1x128x128xbf16> to vector<128x128xbf16>
    %cst_4 = arith.constant dense<0.000000e+00> : vector<256x128xf32>
    %6 = tpu.matmul %3, %5, %cst_4 {dimension_numbers = #tpu.dot_dimension_numbers<[1], [0], [0], [1], [0, 0, 1, 1], [], []>} : vector<256x128xbf16>, vector<128x128xbf16>, vector<256x128xf32> -> vector<256x128xf32>
    %c0_5 = arith.constant 0 : index
    %c0_6 = arith.constant 0 : index
    %c0_7 = arith.constant 0 : index
    %7 = vector.load %arg3[%c0_5, %c0_6, %c0_7] : memref<2x1x128xf32, #tpu.memory_space<vmem>>, vector<1x1x128xf32>
    %8 = vector.shape_cast %7 : vector<1x1x128xf32> to vector<1x128xf32>
    %9 = vector.broadcast %8 : vector<1x128xf32> to vector<256x128xf32>
    %10 = arith.addf %6, %9 : vector<256x128xf32>
    %cst_8 = arith.constant 0.000000e+00 : f32
    %11 = vector.broadcast %cst_8 : f32 to vector<256x128xf32>
    %12 = arith.maximumf %10, %11 : vector<256x128xf32>
    %13 = arith.truncf %12 : vector<256x128xf32> to vector<256x128xbf16>
    %c0_9 = arith.constant 0 : index
    %c0_10 = arith.constant 0 : index
    %c0_11 = arith.constant 0 : index
    %14 = vector.load %arg4[%c0_9, %c0_10, %c0_11] : memref<2x128x128xbf16, #tpu.memory_space<vmem>>, vector<1x128x128xbf16>
    %15 = vector.shape_cast %14 : vector<1x128x128xbf16> to vector<128x128xbf16>
    %cst_12 = arith.constant dense<0.000000e+00> : vector<256x128xf32>
    %16 = tpu.matmul %13, %15, %cst_12 {dimension_numbers = #tpu.dot_dimension_numbers<[1], [0], [0], [1], [0, 0, 1, 1], [], []>} : vector<256x128xbf16>, vector<128x128xbf16>, vector<256x128xf32> -> vector<256x128xf32>
    %c0_13 = arith.constant 0 : index
    %c0_14 = arith.constant 0 : index
    %c0_15 = arith.constant 0 : index
    %17 = vector.load %arg5[%c0_13, %c0_14, %c0_15] : memref<2x1x128xf32, #tpu.memory_space<vmem>>, vector<1x1x128xf32>
    %18 = vector.shape_cast %17 : vector<1x1x128xf32> to vector<1x128xf32>
    %19 = vector.broadcast %18 : vector<1x128xf32> to vector<256x128xf32>
    %20 = arith.addf %16, %19 : vector<256x128xf32>
    %21 = arith.addf %0, %20 : vector<256x128xf32>
    %cst_16 = arith.constant 0.000000e+00 : f32
    %22 = vector.broadcast %cst_16 : f32 to vector<256x128xf32>
    %23 = arith.maximumf %21, %22 : vector<256x128xf32>
    %24 = arith.truncf %23 : vector<256x128xf32> to vector<256x128xbf16>
    %c1 = arith.constant 1 : index
    %c0_17 = arith.constant 0 : index
    %c0_18 = arith.constant 0 : index
    %25 = vector.load %arg2[%c1, %c0_17, %c0_18] : memref<2x128x128xbf16, #tpu.memory_space<vmem>>, vector<1x128x128xbf16>
    %26 = vector.shape_cast %25 : vector<1x128x128xbf16> to vector<128x128xbf16>
    %cst_19 = arith.constant dense<0.000000e+00> : vector<256x128xf32>
    %27 = tpu.matmul %24, %26, %cst_19 {dimension_numbers = #tpu.dot_dimension_numbers<[1], [0], [0], [1], [0, 0, 1, 1], [], []>} : vector<256x128xbf16>, vector<128x128xbf16>, vector<256x128xf32> -> vector<256x128xf32>
    %c1_20 = arith.constant 1 : index
    %c0_21 = arith.constant 0 : index
    %c0_22 = arith.constant 0 : index
    %28 = vector.load %arg3[%c1_20, %c0_21, %c0_22] : memref<2x1x128xf32, #tpu.memory_space<vmem>>, vector<1x1x128xf32>
    %29 = vector.shape_cast %28 : vector<1x1x128xf32> to vector<1x128xf32>
    %30 = vector.broadcast %29 : vector<1x128xf32> to vector<256x128xf32>
    %31 = arith.addf %27, %30 : vector<256x128xf32>
    %cst_23 = arith.constant 0.000000e+00 : f32
    %32 = vector.broadcast %cst_23 : f32 to vector<256x128xf32>
    %33 = arith.maximumf %31, %32 : vector<256x128xf32>
    %34 = arith.truncf %33 : vector<256x128xf32> to vector<256x128xbf16>
    %c1_24 = arith.constant 1 : index
    %c0_25 = arith.constant 0 : index
    %c0_26 = arith.constant 0 : index
    %35 = vector.load %arg4[%c1_24, %c0_25, %c0_26] : memref<2x128x128xbf16, #tpu.memory_space<vmem>>, vector<1x128x128xbf16>
    %36 = vector.shape_cast %35 : vector<1x128x128xbf16> to vector<128x128xbf16>
    %cst_27 = arith.constant dense<0.000000e+00> : vector<256x128xf32>
    %37 = tpu.matmul %34, %36, %cst_27 {dimension_numbers = #tpu.dot_dimension_numbers<[1], [0], [0], [1], [0, 0, 1, 1], [], []>} : vector<256x128xbf16>, vector<128x128xbf16>, vector<256x128xf32> -> vector<256x128xf32>
    %c1_28 = arith.constant 1 : index
    %c0_29 = arith.constant 0 : index
    %c0_30 = arith.constant 0 : index
    %38 = vector.load %arg5[%c1_28, %c0_29, %c0_30] : memref<2x1x128xf32, #tpu.memory_space<vmem>>, vector<1x1x128xf32>
    %39 = vector.shape_cast %38 : vector<1x1x128xf32> to vector<1x128xf32>
    %40 = vector.broadcast %39 : vector<1x128xf32> to vector<256x128xf32>
    %41 = arith.addf %37, %40 : vector<256x128xf32>
    %42 = arith.addf %21, %41 : vector<256x128xf32>
    %c0_31 = arith.constant 0 : index
    %c0_32 = arith.constant 0 : index
    %43 = vector.load %arg6[%c0_31, %c0_32] : memref<256x128xf32, #tpu.memory_space<vmem>>, vector<256x128xf32>
    tpu.vector_store %arg6[%c0_31, %c0_32], %42 {strides = array<i32>} : memref<256x128xf32, #tpu.memory_space<vmem>>, vector<256x128xf32>,
    return
  }
  func.func @transform_0(%arg0: i32) -> (i32, i32) {
    %c0_i32 = arith.constant 0 : i32
    %c0_i32_0 = arith.constant 0 : i32
    return %arg0, %c0_i32 : i32, i32
  }
  func.func @transform_1(%arg0: i32) -> (i32, i32, i32) {
    %c0_i32 = arith.constant 0 : i32
    %c0_i32_0 = arith.constant 0 : i32
    %c0_i32_1 = arith.constant 0 : i32
    %c0_i32_2 = arith.constant 0 : i32
    return %c0_i32, %c0_i32_0, %c0_i32_1 : i32, i32, i32
  }
  func.func @transform_2(%arg0: i32) -> (i32, i32, i32) {
    %c0_i32 = arith.constant 0 : i32
    %c0_i32_0 = arith.constant 0 : i32
    %c0_i32_1 = arith.constant 0 : i32
    %c0_i32_2 = arith.constant 0 : i32
    return %c0_i32, %c0_i32_0, %c0_i32_1 : i32, i32, i32
  }
  func.func @transform_3(%arg0: i32) -> (i32, i32, i32) {
    %c0_i32 = arith.constant 0 : i32
    %c0_i32_0 = arith.constant 0 : i32
    %c0_i32_1 = arith.constant 0 : i32
    %c0_i32_2 = arith.constant 0 : i32
    return %c0_i32, %c0_i32_0, %c0_i32_1 : i32, i32, i32
  }
  func.func @transform_4(%arg0: i32) -> (i32, i32, i32) {
    %c0_i32 = arith.constant 0 : i32
    %c0_i32_0 = arith.constant 0 : i32
    %c0_i32_1 = arith.constant 0 : i32
    %c0_i32_2 = arith.constant 0 : i32
    return %c0_i32, %c0_i32_0, %c0_i32_1 : i32, i32, i32
  }
  func.func @transform_5(%arg0: i32) -> (i32, i32) {
    %c0_i32 = arith.constant 0 : i32
    %c0_i32_0 = arith.constant 0 : i32
    return %arg0, %c0_i32 : i32, i32
  }
}

module attributes {stable_mosaic.version = 11 : i64} {
  func.func @seq_res_block_kernel(%arg0: i32, %arg1: memref<256x128xf32, #tpu.memory_space<vmem>>, %arg2: memref<2x128x128xbf16, #tpu.memory_space<vmem>>, %arg3: memref<2x1x128xf32, #tpu.memory_space<vmem>>, %arg4: memref<2x128x128xbf16, #tpu.memory_space<vmem>>, %arg5: memref<2x1x128xf32, #tpu.memory_space<vmem>>, %arg6: memref<256x128xf32, #tpu.memory_space<vmem>>) attributes {dimension_semantics = [#tpu.dimension_semantics<parallel>], iteration_bounds = array<i64: 1>, scalar_prefetch = 0 : i64, scratch_operands = 0 : i64, tpu.core_type = #tpu.core_type<tc>, window_params = [{transform_indices = @transform_0, window_bounds = array<i64: 256, 128>}, {pipeline_mode = #tpu.pipeline_mode<synchronous>, transform_indices = @transform_1, window_bounds = array<i64: 2, 128, 128>}, {pipeline_mode = #tpu.pipeline_mode<synchronous>, transform_indices = @transform_2, window_bounds = array<i64: 2, 1, 128>}, {pipeline_mode = #tpu.pipeline_mode<synchronous>, transform_indices = @transform_3, window_bounds = array<i64: 2, 128, 128>}, {pipeline_mode = #tpu.pipeline_mode<synchronous>, transform_indices = @transform_4, window_bounds = array<i64: 2, 1, 128>}, {transform_indices = @transform_5, window_bounds = array<i64: 256, 128>}]} {
    %c0 = arith.constant 0 : index
    %c0_0 = arith.constant 0 : index
    %0 = vector.load %arg1[%c0, %c0_0] : memref<256x128xf32, #tpu.memory_space<vmem>>, vector<256x128xf32>
    %cst = arith.constant 0.000000e+00 : f32
    %1 = vector.broadcast %cst : f32 to vector<256x128xf32>
    %2 = arith.maximumf %0, %1 : vector<256x128xf32>
    %3 = arith.truncf %2 : vector<256x128xf32> to vector<256x128xbf16>
    %c0_1 = arith.constant 0 : index
    %c0_2 = arith.constant 0 : index
    %c0_3 = arith.constant 0 : index
    %4 = vector.load %arg2[%c0_1, %c0_2, %c0_3] : memref<2x128x128xbf16, #tpu.memory_space<vmem>>, vector<1x128x128xbf16>
    %5 = vector.shape_cast %4 : vector<1x128x128xbf16> to vector<128x128xbf16>
    %cst_4 = arith.constant dense<0.000000e+00> : vector<256x128xf32>
    %6 = tpu.matmul %3, %5, %cst_4 {dimension_numbers = #tpu.dot_dimension_numbers<[1], [0], [0], [1], [0, 0, 1, 1], [], []>} : vector<256x128xbf16>, vector<128x128xbf16>, vector<256x128xf32> -> vector<256x128xf32>
    %c0_5 = arith.constant 0 : index
    %c0_6 = arith.constant 0 : index
    %c0_7 = arith.constant 0 : index
    %7 = vector.load %arg3[%c0_5, %c0_6, %c0_7] : memref<2x1x128xf32, #tpu.memory_space<vmem>>, vector<1x1x128xf32>
    %8 = vector.shape_cast %7 : vector<1x1x128xf32> to vector<1x128xf32>
    %9 = vector.broadcast %8 : vector<1x128xf32> to vector<256x128xf32>
    %10 = arith.addf %6, %9 : vector<256x128xf32>
    %cst_8 = arith.constant 0.000000e+00 : f32
    %11 = vector.broadcast %cst_8 : f32 to vector<256x128xf32>
    %12 = arith.maximumf %10, %11 : vector<256x128xf32>
    %13 = arith.truncf %12 : vector<256x128xf32> to vector<256x128xbf16>
    %c0_9 = arith.constant 0 : index
    %c0_10 = arith.constant 0 : index
    %c0_11 = arith.constant 0 : index
    %14 = vector.load %arg4[%c0_9, %c0_10, %c0_11] : memref<2x128x128xbf16, #tpu.memory_space<vmem>>, vector<1x128x128xbf16>
    %15 = vector.shape_cast %14 : vector<1x128x128xbf16> to vector<128x128xbf16>
    %cst_12 = arith.constant dense<0.000000e+00> : vector<256x128xf32>
    %16 = tpu.matmul %13, %15, %cst_12 {dimension_numbers = #tpu.dot_dimension_numbers<[1], [0], [0], [1], [0, 0, 1, 1], [], []>} : vector<256x128xbf16>, vector<128x128xbf16>, vector<256x128xf32> -> vector<256x128xf32>
    %c0_13 = arith.constant 0 : index
    %c0_14 = arith.constant 0 : index
    %c0_15 = arith.constant 0 : index
    %17 = vector.load %arg5[%c0_13, %c0_14, %c0_15] : memref<2x1x128xf32, #tpu.memory_space<vmem>>, vector<1x1x128xf32>
    %18 = vector.shape_cast %17 : vector<1x1x128xf32> to vector<1x128xf32>
    %19 = vector.broadcast %18 : vector<1x128xf32> to vector<256x128xf32>
    %20 = arith.addf %16, %19 : vector<256x128xf32>
    %21 = arith.addf %0, %20 : vector<256x128xf32>
    %cst_16 = arith.constant 0.000000e+00 : f32
    %22 = vector.broadcast %cst_16 : f32 to vector<256x128xf32>
    %23 = arith.maximumf %21, %22 : vector<256x128xf32>
    %24 = arith.truncf %23 : vector<256x128xf32> to vector<256x128xbf16>
    %c1 = arith.constant 1 : index
    %c0_17 = arith.constant 0 : index
    %c0_18 = arith.constant 0 : index
    %25 = vector.load %arg2[%c1, %c0_17, %c0_18] : memref<2x128x128xbf16, #tpu.memory_space<vmem>>, vector<1x128x128xbf16>
    %26 = vector.shape_cast %25 : vector<1x128x128xbf16> to vector<128x128xbf16>
    %cst_19 = arith.constant dense<0.000000e+00> : vector<256x128xf32>
    %27 = tpu.matmul %24, %26, %cst_19 {dimension_numbers = #tpu.dot_dimension_numbers<[1], [0], [0], [1], [0, 0, 1, 1], [], []>} : vector<256x128xbf16>, vector<128x128xbf16>, vector<256x128xf32> -> vector<256x128xf32>
    %c1_20 = arith.constant 1 : index
    %c0_21 = arith.constant 0 : index
    %c0_22 = arith.constant 0 : index
    %28 = vector.load %arg3[%c1_20, %c0_21, %c0_22] : memref<2x1x128xf32, #tpu.memory_space<vmem>>, vector<1x1x128xf32>
    %29 = vector.shape_cast %28 : vector<1x1x128xf32> to vector<1x128xf32>
    %30 = vector.broadcast %29 : vector<1x128xf32> to vector<256x128xf32>
    %31 = arith.addf %27, %30 : vector<256x128xf32>
    %cst_23 = arith.constant 0.000000e+00 : f32
    %32 = vector.broadcast %cst_23 : f32 to vector<256x128xf32>
    %33 = arith.maximumf %31, %32 : vector<256x128xf32>
    %34 = arith.truncf %33 : vector<256x128xf32> to vector<256x128xbf16>
    %c1_24 = arith.constant 1 : index
    %c0_25 = arith.constant 0 : index
    %c0_26 = arith.constant 0 : index
    %35 = vector.load %arg4[%c1_24, %c0_25, %c0_26] : memref<2x128x128xbf16, #tpu.memory_space<vmem>>, vector<1x128x128xbf16>
    %36 = vector.shape_cast %35 : vector<1x128x128xbf16> to vector<128x128xbf16>
    %cst_27 = arith.constant dense<0.000000e+00> : vector<256x128xf32>
    %37 = tpu.matmul %34, %36, %cst_27 {dimension_numbers = #tpu.dot_dimension_numbers<[1], [0], [0], [1], [0, 0, 1, 1], [], []>} : vector<256x128xbf16>, vector<128x128xbf16>, vector<256x128xf32> -> vector<256x128xf32>
    %c1_28 = arith.constant 1 : index
    %c0_29 = arith.constant 0 : index
    %c0_30 = arith.constant 0 : index
    %38 = vector.load %arg5[%c1_28, %c0_29, %c0_30] : memref<2x1x128xf32, #tpu.memory_space<vmem>>, vector<1x1x128xf32>
    %39 = vector.shape_cast %38 : vector<1x1x128xf32> to vector<1x128xf32>
    %40 = vector.broadcast %39 : vector<1x128xf32> to vector<256x128xf32>
    %41 = arith.addf %37, %40 : vector<256x128xf32>
    %42 = arith.addf %21, %41 : vector<256x128xf32>
    %c0_31 = arith.constant 0 : index
    %c0_32 = arith.constant 0 : index
    %43 = vector.load %arg6[%c0_31, %c0_32] : memref<256x128xf32, #tpu.memory_space<vmem>>, vector<256x128xf32>
    tpu.vector_store %arg6[%c0_31, %c0_32], %42 {strides = array<i32>} : memref<256x128xf32, #tpu.memory_space<vmem>>, vector<256x128xf32>,
    return
  }
  func.func @transform_0(%arg0: i32) -> (i32, i32) {
    %c0_i32 = arith.constant 0 : i32
    %c0_i32_0 = arith.constant 0 : i32
    return %arg0, %c0_i32 : i32, i32
  }
  func.func @transform_1(%arg0: i32) -> (i32, i32, i32) {
    %c0_i32 = arith.constant 0 : i32
    %c0_i32_0 = arith.constant 0 : i32
    %c0_i32_1 = arith.constant 0 : i32
    %c0_i32_2 = arith.constant 0 : i32
    return %c0_i32, %c0_i32_0, %c0_i32_1 : i32, i32, i32
  }
  func.func @transform_2(%arg0: i32) -> (i32, i32, i32) {
    %c0_i32 = arith.constant 0 : i32
    %c0_i32_0 = arith.constant 0 : i32
    %c0_i32_1 = arith.constant 0 : i32
    %c0_i32_2 = arith.constant 0 : i32
    return %c0_i32, %c0_i32_0, %c0_i32_1 : i32, i32, i32
  }
  func.func @transform_3(%arg0: i32) -> (i32, i32, i32) {
    %c0_i32 = arith.constant 0 : i32
    %c0_i32_0 = arith.constant 0 : i32
    %c0_i32_1 = arith.constant 0 : i32
    %c0_i32_2 = arith.constant 0 : i32
    return %c0_i32, %c0_i32_0, %c0_i32_1 : i32, i32, i32
  }
  func.func @transform_4(%arg0: i32) -> (i32, i32, i32) {
    %c0_i32 = arith.constant 0 : i32
    %c0_i32_0 = arith.constant 0 : i32
    %c0_i32_1 = arith.constant 0 : i32
    %c0_i32_2 = arith.constant 0 : i32
    return %c0_i32, %c0_i32_0, %c0_i32_1 : i32, i32, i32
  }
  func.func @transform_5(%arg0: i32) -> (i32, i32) {
    %c0_i32 = arith.constant 0 : i32
    %c0_i32_0 = arith.constant 0 : i32
    return %arg0, %c0_i32 : i32, i32
  }
}

</mosaic_0001>

<bundles_post_ra>
// kernel: tpu_custom_call.1
= control target key start
LH: loop header
LB: loop body
LE: loop exit
PB: predicated region body
PF: predicated region fallthrough
CT: control target
= control target key end

     0   :  { %10 = vsyncpa [#allocation3], 0  ;;  %s2295_s0 = inlined_call_operand.hbm [shape: f32[256,128], index: 0, kind: input, shape index: {}]   ;;  %s2296_s1 = inlined_call_operand.hbm [shape: bf16[2,128,128], index: 1, kind: input, shape index: {}]   ;;  %s2297_s2 = inlined_call_operand.vmem [shape: f32[2,1,128], index: 2, kind: input, shape index: {}]   ;;  %s2298_s3 = inlined_call_operand.hbm [shape: bf16[2,128,128], index: 3, kind: input, shape index: {}]   ;;  %s2299_s4 = inlined_call_operand.vmem [shape: f32[2,1,128], index: 4, kind: input, shape index: {}]   ;;  %s2300_s5 = inlined_call_operand.hbm [shape: f32[256,128], index: 5, kind: output, shape index: {}]  }
   0x1   :  { %11 = vsyncpa [#allocation6], 0 }
   0x2   :  { %12 = vsyncpa [#allocation4], 0  ;;  %s1793_s18 = smov [#allocation5]   ;;  %s1699_s22 = scalar_lea.hbm %s2296_s1, 2048 }
   0x3   :  { %s30_s19 = sshll.u32 %s1793_s18, 4  ;;  %p1700_p0 = scmp.ne.s32.totalorder %s2296_s1, %s1699_s22  ;;  %s31_s19 = int_to_ptr.vmem [resolvable:$true] %s30_s19 }
   0x4   :  { %p1703_p1 = scmp.lt.u32.totalorder %s1699_s22, %s2296_s1 }
   0x6   :  { %p1705_p2 = pnand %p1703_p1, %p1700_p0 }
   0x8   :  { %1708 = shalt.err (!%p1705_p2)
}
   0x9   :  { %s1709_s27 = scalar_lea.vmem %s31_s19, 2048  ;;  %p1714_p4 = scmp.lt.s32.totalorder %s31_s19, %s31_s19 }
   0xa   :  { %p1710_p3 = scmp.ne.s32.totalorder %s31_s19, %s1709_s27  ;;  %p1715_p5 = scmp.lt.s32.totalorder %s1709_s27, %s1709_s27 }
   0xc   :  { %p1716_p6 = por %p1715_p5, %p1714_p4 }
   0xe   :  { %p1717_p7 = pnand %p1716_p6, %p1710_p3 }
  0x10   :  { %1720 = shalt.err (!%p1717_p7)
}
  0x11   :  { %s1794_s28 = smov 64   ;;  %s1795_s29 = smov 4  }
  0x12   :  { %36 = dma.hbm_to_vmem [thread:$0]  %s2296_s1, 2048, %s31_s19, [#allocation6], %s1794_s28, %s1794_s28, %s1795_s29  }
  0x13   :  { %s1796_s7 = smov [#allocation2]   ;;  %s1721_s11 = scalar_lea.hbm %s2295_s0, 4096 }
  0x14   :  { %s18_s8 = sshll.u32 %s1796_s7, 4  ;;  %p1722_p8 = scmp.ne.s32.totalorder %s2295_s0, %s1721_s11  ;;  %s19_s8 = int_to_ptr.vmem [resolvable:$true] %s18_s8 }
  0x15   :  { %p1725_p9 = scmp.lt.u32.totalorder %s1721_s11, %s2295_s0 }
  0x17   :  { %p1727_p10 = pnand %p1725_p9, %p1722_p8 }
  0x19   :  { %1730 = shalt.err (!%p1727_p10)
}
  0x1a   :  { %s1731_s16 = scalar_lea.vmem %s19_s8, 4096  ;;  %p1736_p12 = scmp.lt.s32.totalorder %s19_s8, %s19_s8 }
  0x1b   :  { %p1732_p11 = scmp.ne.s32.totalorder %s19_s8, %s1731_s16  ;;  %p1737_p13 = scmp.lt.s32.totalorder %s1731_s16, %s1731_s16 }
  0x1d   :  { %p1738_p0 = por %p1737_p13, %p1736_p12 }
  0x1f   :  { %p1739_p1 = pnand %p1738_p0, %p1732_p11 }
  0x21   :  { %1742 = shalt.err (!%p1739_p1)
}
  0x22   :  { %s1797_s1 = smov 128   ;;  %s1798_s17 = smov 8  }
  0x23   :  { %24 = dma.hbm_to_vmem [thread:$0]  %s2295_s0, 4096, %s19_s8, [#allocation3], %s1797_s1, %s1797_s1, %s1798_s17  }
  0x24   :  { %s1799_s20 = smov [#allocation7]   ;;  %s1743_s24 = scalar_lea.hbm %s2298_s3, 2048 }
  0x25   :  { %s44_s21 = sshll.u32 %s1799_s20, 4  ;;  %p1744_p2 = scmp.ne.s32.totalorder %s2298_s3, %s1743_s24  ;;  %s45_s21 = int_to_ptr.vmem [resolvable:$true] %s44_s21 }
  0x26   :  { %p1747_p3 = scmp.lt.u32.totalorder %s1743_s24, %s2298_s3 }
  0x28   :  { %p1749_p4 = pnand %p1747_p3, %p1744_p2 }
  0x2a   :  { %1752 = shalt.err (!%p1749_p4)
}
  0x2b   :  { %s1753_s6 = scalar_lea.vmem %s45_s21, 2048  ;;  %p1758_p6 = scmp.lt.s32.totalorder %s45_s21, %s45_s21 }
  0x2c   :  { %p1754_p5 = scmp.ne.s32.totalorder %s45_s21, %s1753_s6  ;;  %p1759_p7 = scmp.lt.s32.totalorder %s1753_s6, %s1753_s6 }
  0x2e   :  { %p1760_p8 = por %p1759_p7, %p1758_p6 }
  0x30   :  { %p1761_p9 = pnand %p1760_p8, %p1754_p5 }
  0x32   :  { %1764 = shalt.err (!%p1761_p9)
}
  0x33   :  { %50 = dma.hbm_to_vmem [thread:$0]  %s2298_s3, 2048, %s45_s21, [#allocation6], %s1794_s28, %s1794_s28, %s1795_s29  }
  0x34   :  { %1787 = dma.done.wait [#allocation3], 4096  }
  0x35   :  { %1788 = vsyncadd [#allocation3], 4294963200 }
  0x36   :  { %1789 = dma.done.wait [#allocation6], 4096  }
  0x37   :  { %1790 = vsyncadd [#allocation6], 4294963200  ;;  %v1667_v0 = vld [vmem:[#allocation5] sm:$0xff]   ;;  %v1668_v1 = vld [vmem:[#allocation5 + $0x8] sm:$0xff]  }
  0x38   :  { %1467 = vmatprep.subr.bf16.mxu0 %v1667_v0  ;;  %v1669_v2 = vld [vmem:[#allocation5 + $0x10] sm:$0xff]   ;;  %v1670_v3 = vld [vmem:[#allocation5 + $0x18] sm:$0xff]   ;;  %v1876_v4 = vld [vmem:[#allocation2] sm:$0xff] }
  0x39   :  { %1468 = vmatpush3.bf16.msra.mxu0 %v1667_v0  ;;  %v1878_v5 = vld [vmem:[#allocation2 + $0x8] sm:$0xff]  ;;  %v95_v6 = vmax.f32 %v1876_v4, 0.0  ;;  %v1671_v9 = vld [vmem:[#allocation5 + $0x20] sm:$0xff]   ;;  %v1882_v11 = vld [vmem:[#allocation2 + $0x10] sm:$0xff] }
  0x3a   :  { %1469 = vmatprep.subr.bf16.mxu0 %v1668_v1  ;;  %v96_v7 = vmax.f32 %v1878_v5, 0.0  ;;  %v1672_v10 = vld [vmem:[#allocation5 + $0x28] sm:$0xff]   ;;  %v1884_v12 = vld [vmem:[#allocation2 + $0x18] sm:$0xff]  ;;  %v1886_v13 = vld [vmem:[#allocation2 + $0x20] sm:$0xff]  ;;  %v97_v17 = vmax.f32 %v1882_v11, 0.0 }
  0x3b   :  { %v1673_v14 = vld [vmem:[#allocation5 + $0x30] sm:$0xff]   ;;  %v1888_v15 = vld [vmem:[#allocation2 + $0x28] sm:$0xff]  ;;  %v1893_v18 = vld [vmem:[#allocation2 + $0x38] sm:$0xff]  ;;  %v98_v20 = vmax.f32 %v1884_v12, 0.0  ;;  %v99_v22 = vmax.f32 %v1886_v13, 0.0 }
  0x3c   :  { %v127_v8 = vpack.c.bf16 %v96_v7, %v95_v6  ;;  %v1890_v16 = vld [vmem:[#allocation2 + $0x30] sm:$0xff]  ;;  %v1675_v19 = vld [vmem:[#allocation7] sm:$0xff]   ;;  %v1676_v23 = vld [vmem:[#allocation7 + $0x8] sm:$0xff]   ;;  %v100_v25 = vmax.f32 %v1888_v15, 0.0  ;;  %v102_v29 = vmax.f32 %v1893_v18, 0.0 }
  0x3d   :  { %1470 = vmatpush3.bf16.msra.mxu0 %v1668_v1  ;;  %v1896_v21 = vld [vmem:[#allocation2 + $0x40] sm:$0xff]  ;;  %1515 = vmatprep.subr.bf16.mxu1 %v1675_v19  ;;  %v1674_v24 = vld [vmem:[#allocation5 + $0x38] sm:$0xff]   ;;  %v1900_v26 = vld [vmem:[#allocation2 + $0x48] sm:$0xff]  ;;  %v101_v27 = vmax.f32 %v1890_v16, 0.0  ;;  %v128_v34 = vpack.c.bf16 %v98_v20, %v97_v17 }
  0x3e   :  { %1471 = vmatprep.subr.bf16.mxu0 %v1669_v2  ;;  %1483 = vmatprep.mubr.bf16.mxu0 %v127_v8  ;;  %v1677_v28 = vld [vmem:[#allocation7 + $0x10] sm:$0xff]   ;;  %v103_v30 = vmax.f32 %v1896_v21, 0.0  ;;  %v104_v31 = vmax.f32 %v1900_v26, 0.0  ;;  %v1678_v32 = vld [vmem:[#allocation7 + $0x18] sm:$0xff]   ;;  %v1679_v33 = vld [vmem:[#allocation7 + $0x20] sm:$0xff]   ;;  %v129_v35 = vpack.c.bf16 %v100_v25, %v99_v22 }
  0x3f   :  { %1516 = vmatpush3.bf16.msra.mxu1 %v1675_v19  ;;  %v1680_v36 = vld [vmem:[#allocation7 + $0x28] sm:$0xff]   ;;  %v130_v37 = vpack.c.bf16 %v102_v29, %v101_v27  ;;  %v1906_v39 = vld [vmem:[#allocation2 + $0x50] sm:$0xff]  ;;  %v1908_v40 = vld [vmem:[#allocation2 + $0x58] sm:$0xff] }
  0x40   :  { %1517 = vmatprep.subr.bf16.mxu1 %v1676_v23  ;;  %v131_v38 = vpack.c.bf16 %v104_v31, %v103_v30  ;;  %v1910_v41 = vld [vmem:[#allocation2 + $0x60] sm:$0xff]  ;;  %v1912_v42 = vld [vmem:[#allocation2 + $0x68] sm:$0xff]  ;;  %v105_v43 = vmax.f32 %v1906_v39, 0.0  ;;  %v106_v44 = vmax.f32 %v1908_v40, 0.0  ;;  %v1918_v49 = vld [vmem:[#allocation2 + $0x70] sm:$0xff] }
  0x41   :  { %1472 = vmatpush3.bf16.msra.mxu0 %v1669_v2  ;;  %v107_v45 = vmax.f32 %v1910_v41, 0.0  ;;  %v108_v46 = vmax.f32 %v1912_v42, 0.0  ;;  %v1920_v50 = vld [vmem:[#allocation2 + $0x78] sm:$0xff]  ;;  %v1922_v51 = vld [vmem:[#allocation2 + $0x80] sm:$0xff]  ;;  %v1924_v52 = vld [vmem:[#allocation2 + $0x88] sm:$0xff]  ;;  %v109_v53 = vmax.f32 %v1918_v49, 0.0 }
  0x42   :  { %1473 = vmatprep.subr.bf16.mxu0 %v1670_v3  ;;  %v132_v47 = vpack.c.bf16 %v106_v44, %v105_v43  ;;  %v110_v54 = vmax.f32 %v1920_v50, 0.0  ;;  %v111_v55 = vmax.f32 %v1922_v51, 0.0  ;;  %v112_v56 = vmax.f32 %v1924_v52, 0.0  ;;  %v1930_v59 = vld [vmem:[#allocation2 + $0x90] sm:$0xff]  ;;  %v1932_v60 = vld [vmem:[#allocation2 + $0x98] sm:$0xff]  ;;  %v1934_v61 = vld [vmem:[#allocation2 + $0xa0] sm:$0xff] }
  0x43   :  { %1518 = vmatpush3.bf16.msra.mxu1 %v1676_v23  ;;  %v133_v48 = vpack.c.bf16 %v108_v46, %v107_v45  ;;  %v1936_v62 = vld [vmem:[#allocation2 + $0xa8] sm:$0xff]  ;;  %v113_v63 = vmax.f32 %v1930_v59, 0.0  ;;  %v114_v0 = vmax.f32 %v1932_v60, 0.0  ;;  %v115_v1 = vmax.f32 %v1934_v61, 0.0  ;;  %v1942_v7 = vld [vmem:[#allocation2 + $0xb0] sm:$0xff]  ;;  %v1944_v8 = vld [vmem:[#allocation2 + $0xb8] sm:$0xff] }
  0x44   :  { %1519 = vmatprep.subr.bf16.mxu1 %v1677_v28  ;;  %v134_v57 = vpack.c.bf16 %v110_v54, %v109_v53  ;;  %v135_v58 = vpack.c.bf16 %v112_v56, %v111_v55  ;;  %v116_v2 = vmax.f32 %v1936_v62, 0.0  ;;  %v118_v17 = vmax.f32 %v1944_v8, 0.0  ;;  %v1956_v25 = vld [vmem:[#allocation2 + $0xd8] sm:$0xff]  ;;  %v1958_v27 = vld [vmem:[#allocation2 + $0xe0] sm:$0xff]  ;;  %v1681_v44 = vld [vmem:[#allocation7 + $0x30] sm:$0xff]  }
  0x45   :  { %1474 = vmatpush3.bf16.msra.mxu0 %v1670_v3  ;;  %v136_v3 = vpack.c.bf16 %v114_v0, %v113_v63  ;;  %v122_v30 = vmax.f32 %v1956_v25, 0.0  ;;  %v123_v31 = vmax.f32 %v1958_v27, 0.0  ;;  %v1682_v45 = vld [vmem:[#allocation7 + $0x38] sm:$0xff]   ;;  %v1683_v46 = vld [vmem:[#allocation5 + $0x40] sm:$0xff]   ;;  %v1688_v55 = vld [vmem:[#allocation5 + $0x68] sm:$0xff]  }
  0x46   :  { %1475 = vmatprep.subr.bf16.mxu0 %v1671_v9  ;;  %v137_v6 = vpack.c.bf16 %v116_v2, %v115_v1  ;;  %v1686_v53 = vld [vmem:[#allocation5 + $0x58] sm:$0xff]   ;;  %v1687_v54 = vld [vmem:[#allocation5 + $0x60] sm:$0xff]   ;;  %v1689_v56 = vld [vmem:[#allocation5 + $0x70] sm:$0xff]  }
  0x47   :  { %1520 = vmatpush3.bf16.msra.mxu1 %v1677_v28  ;;  %v1960_v28 = vld [vmem:[#allocation2 + $0xe8] sm:$0xff] }
  0x48   :  { %1521 = vmatprep.subr.bf16.mxu1 %v1678_v32 }
  0x49   :  { %1476 = vmatpush3.bf16.msra.mxu0 %v1671_v9  ;;  %v1946_v9 = vld [vmem:[#allocation2 + $0xc0] sm:$0xff] }
  0x4a   :  { %1477 = vmatprep.subr.bf16.mxu0 %v1672_v10  ;;  %v119_v19 = vmax.f32 %v1946_v9, 0.0 }
  0x4b   :  { %1522 = vmatpush3.bf16.msra.mxu1 %v1678_v32  ;;  %v124_v32 = vmax.f32 %v1960_v28, 0.0 }
  0x4c   :  { %1523 = vmatprep.subr.bf16.mxu1 %v1679_v33 }
  0x4d   :  { %1478 = vmatpush3.bf16.msra.mxu0 %v1672_v10  ;;  %v1948_v10 = vld [vmem:[#allocation2 + $0xc8] sm:$0xff] }
  0x4e   :  { %1479 = vmatprep.subr.bf16.mxu0 %v1673_v14  ;;  %v120_v20 = vmax.f32 %v1948_v10, 0.0 }
  0x4f   :  { %1524 = vmatpush3.bf16.msra.mxu1 %v1679_v33 }
  0x50   :  { %1525 = vmatprep.subr.bf16.mxu1 %v1680_v36  ;;  %v139_v23 = vpack.c.bf16 %v120_v20, %v119_v19 }
  0x51   :  { %1480 = vmatpush3.bf16.msra.mxu0 %v1673_v14  ;;  %v117_v14 = vmax.f32 %v1942_v7, 0.0 }
  0x52   :  { %1481 = vmatprep.subr.bf16.mxu0 %v1674_v24 }
  0x53   :  { %1526 = vmatpush3.bf16.msra.mxu1 %v1680_v36  ;;  %v138_v22 = vpack.c.bf16 %v118_v17, %v117_v14  ;;  %v1968_v36 = vld [vmem:[#allocation2 + $0xf8] sm:$0xff] }
  0x54   :  { %1527 = vmatprep.subr.bf16.mxu1 %v1681_v44 }
  0x55   :  { %1482 = vmatpush3.bf16.msra.mxu0 %v1674_v24  ;;  %v1954_v24 = vld [vmem:[#allocation2 + $0xd0] sm:$0xff] }
  0x56   :  { %v121_v29 = vmax.f32 %v1954_v24, 0.0  ;;  %1563 = vmatprep.subr.bf16.mxu0 %v1683_v46 }
  0x57   :  { %1528 = vmatpush3.bf16.msra.mxu1 %v1681_v44 }
  0x58   :  { %1484 = vmatmul.mubr.bf16.vlgmr.msra.gmra.mrb[0].mxu0 %v128_v34  ;;  %v140_v33 = vpack.c.bf16 %v122_v30, %v121_v29  ;;  %v141_v34 = vpack.c.bf16 %v124_v32, %v123_v31  ;;  %1529 = vmatprep.subr.bf16.mxu1 %v1682_v45 }
  0x59   :  { %1487 = vmatprep.mubr.bf16.mxu0 %v129_v35  ;;  %v1966_v35 = vld [vmem:[#allocation2 + $0xf0] sm:$0xff]  ;;  %1564 = vmatpush3.bf16.msra.mxu0 %v1683_v46 }
  0x5b   :  { %1530 = vmatpush3.bf16.msra.mxu1 %v1682_v45 }
  0x60   :  { %1488 = vmatmul.mubr.bf16.gmra.mrb[4].mxu0 %v130_v37  ;;  %v125_v37 = vmax.f32 %v1966_v35, 0.0 }
  0x61   :  { %1491 = vmatprep.mubr.bf16.mxu0 %v131_v38  ;;  %v126_v38 = vmax.f32 %v1968_v36, 0.0 }
  0x63   :  { %v142_v43 = vpack.c.bf16 %v126_v38, %v125_v37 }
  0x68   :  { %1492 = vmatmul.mubr.bf16.gmra.mrb[8].mxu0 %v132_v47  ;;  %v1684_v47 = vld [vmem:[#allocation5 + $0x48] sm:$0xff]  }
  0x69   :  { %1495 = vmatprep.mubr.bf16.mxu0 %v133_v48  ;;  %1565 = vmatprep.subr.bf16.mxu0 %v1684_v47  ;;  %v1685_v48 = vld [vmem:[#allocation5 + $0x50] sm:$0xff]  }
  0x6a   :  { %1566 = vmatpush3.bf16.msra.mxu0 %v1684_v47 }
  0x6b   :  { %1567 = vmatprep.subr.bf16.mxu0 %v1685_v48 }
  0x6e   :  { %1568 = vmatpush3.bf16.msra.mxu0 %v1685_v48 }
  0x6f   :  { %1569 = vmatprep.subr.bf16.mxu0 %v1686_v53 }
  0x70   :  { %1496 = vmatmul.mubr.bf16.gmra.mrb[12].mxu0 %v134_v57  ;;  %v1975_v57 = vld [vmem:[%s2297_s2] ss:$0 sm:$0xff] }
  0x71   :  { %1499 = vmatprep.mubr.bf16.mxu0 %v135_v58 }
  0x72   :  { %1570 = vmatpush3.bf16.msra.mxu0 %v1686_v53 }
  0x73   :  { %1571 = vmatprep.subr.bf16.mxu0 %v1687_v54 }
  0x76   :  { %1572 = vmatpush3.bf16.msra.mxu0 %v1687_v54 }
  0x77   :  { %1573 = vmatprep.subr.bf16.mxu0 %v1688_v55 }
  0x78   :  { %1500 = vmatmul.mubr.bf16.gmra.mrb[16].mxu0 %v136_v3 }
  0x79   :  { %1503 = vmatprep.mubr.bf16.mxu0 %v137_v6 }
  0x7a   :  { %1574 = vmatpush3.bf16.msra.mxu0 %v1688_v55 }
  0x7b   :  { %1575 = vmatprep.subr.bf16.mxu0 %v1689_v56 }
  0x7e   :  { %1576 = vmatpush3.bf16.msra.mxu0 %v1689_v56 }
  0x80   :  { %1504 = vmatmul.mubr.bf16.gmra.mrb[20].mxu0 %v138_v22 }
  0x81   :  { %1507 = vmatprep.mubr.bf16.mxu0 %v139_v23 }
  0x88   :  { %1508 = vmatmul.mubr.bf16.gmra.mrb[24].mxu0 %v140_v33 }
  0x89   :  { %1511 = vmatprep.mubr.bf16.mxu0 %v141_v34 }
  0x90   :  { %1512 = vmatmul.mubr.bf16.gmra.mrb[28].mxu0 %v142_v43 }
 0x12b   :  { %v1485_v58 = vpop.f32.mrb[0].mxu0 }
 0x12c   :  { %v257_v63 = vadd.f32 %v1485_v58, %v1975_v57  ;;  %v248_v0 = vpop.f32.mrb[1].mxu0 }
 0x12d   :  { %v249_v1 = vadd.f32 %v1975_v57, %v248_v0  ;;  %v1486_v2 = vpop.f32.mrb[2].mxu0 }
 0x12e   :  { %v260_v3 = vadd.f32 %v1486_v2, %v1975_v57  ;;  %v251_v6 = vpop.f32.mrb[3].mxu0  ;;  %v377_v17 = vmax.f32 %v257_v63, 0.0 }
 0x12f   :  { %v252_v14 = vadd.f32 %v1975_v57, %v251_v6  ;;  %v375_v20 = vmax.f32 %v249_v1, 0.0 }
 0x130   :  { %v378_v19 = vmax.f32 %v260_v3, 0.0 }
 0x131   :  { %v376_v22 = vmax.f32 %v252_v14, 0.0 }
 0x132   :  { %v408_v23 = vpack.c.bf16 %v378_v19, %v377_v17 }
 0x133   :  { %v1489_v29 = vpop.f32.mrb[4].mxu0  ;;  %v407_v30 = vpack.c.bf16 %v376_v22, %v375_v20 }
 0x134   :  { %v273_v31 = vadd.f32 %v1489_v29, %v1975_v57  ;;  %v264_v32 = vpop.f32.mrb[5].mxu0 }
 0x135   :  { %v265_v33 = vadd.f32 %v1975_v57, %v264_v32  ;;  %v1490_v34 = vpop.f32.mrb[6].mxu0  ;;  %1531 = vmatprep.mubr.bf16.mxu1 %v407_v30 }
 0x136   :  { %v276_v37 = vadd.f32 %v1490_v34, %v1975_v57  ;;  %v267_v38 = vpop.f32.mrb[7].mxu0  ;;  %1532 = vmatmul.mubr.bf16.vlgmr.msra.gmra.mrb[0].mxu1 %v408_v23  ;;  %v381_v44 = vmax.f32 %v273_v31, 0.0 }
 0x137   :  { %v268_v43 = vadd.f32 %v1975_v57, %v267_v38  ;;  %v379_v46 = vmax.f32 %v265_v33, 0.0 }
 0x138   :  { %v382_v45 = vmax.f32 %v276_v37, 0.0 }
 0x139   :  { %v380_v47 = vmax.f32 %v268_v43, 0.0 }
 0x13a   :  { %v410_v48 = vpack.c.bf16 %v382_v45, %v381_v44 }
 0x13b   :  { %v409_v53 = vpack.c.bf16 %v380_v47, %v379_v46  ;;  %v1493_v54 = vpop.f32.mrb[8].mxu0 }
 0x13c   :  { %v289_v55 = vadd.f32 %v1493_v54, %v1975_v57  ;;  %v280_v56 = vpop.f32.mrb[9].mxu0 }
 0x13d   :  { %v281_v58 = vadd.f32 %v1975_v57, %v280_v56  ;;  %v1494_v63 = vpop.f32.mrb[10].mxu0  ;;  %1535 = vmatprep.mubr.bf16.mxu1 %v409_v53 }
 0x13e   :  { %v292_v0 = vadd.f32 %v1494_v63, %v1975_v57  ;;  %v283_v1 = vpop.f32.mrb[11].mxu0  ;;  %1536 = vmatmul.mubr.bf16.gmra.mrb[4].mxu1 %v410_v48  ;;  %v385_v3 = vmax.f32 %v289_v55, 0.0 }
 0x13f   :  { %v284_v2 = vadd.f32 %v1975_v57, %v283_v1  ;;  %v383_v14 = vmax.f32 %v281_v58, 0.0 }
 0x140   :  { %v386_v6 = vmax.f32 %v292_v0, 0.0 }
 0x141   :  { %v384_v17 = vmax.f32 %v284_v2, 0.0 }
 0x142   :  { %v412_v19 = vpack.c.bf16 %v386_v6, %v385_v3 }
 0x143   :  { %v411_v20 = vpack.c.bf16 %v384_v17, %v383_v14  ;;  %v1497_v22 = vpop.f32.mrb[12].mxu0 }
 0x144   :  { %v305_v23 = vadd.f32 %v1497_v22, %v1975_v57  ;;  %v296_v29 = vpop.f32.mrb[13].mxu0 }
 0x145   :  { %v297_v30 = vadd.f32 %v1975_v57, %v296_v29  ;;  %v1498_v31 = vpop.f32.mrb[14].mxu0  ;;  %1539 = vmatprep.mubr.bf16.mxu1 %v411_v20 }
 0x146   :  { %v308_v32 = vadd.f32 %v1498_v31, %v1975_v57  ;;  %v299_v33 = vpop.f32.mrb[15].mxu0  ;;  %1540 = vmatmul.mubr.bf16.gmra.mrb[8].mxu1 %v412_v19  ;;  %v389_v37 = vmax.f32 %v305_v23, 0.0 }
 0x147   :  { %v300_v34 = vadd.f32 %v1975_v57, %v299_v33  ;;  %v387_v43 = vmax.f32 %v297_v30, 0.0 }
 0x148   :  { %v390_v38 = vmax.f32 %v308_v32, 0.0 }
 0x149   :  { %v388_v44 = vmax.f32 %v300_v34, 0.0 }
 0x14a   :  { %v414_v45 = vpack.c.bf16 %v390_v38, %v389_v37 }
 0x14b   :  { %v413_v46 = vpack.c.bf16 %v388_v44, %v387_v43  ;;  %v1501_v47 = vpop.f32.mrb[16].mxu0 }
 0x14c   :  { %v321_v48 = vadd.f32 %v1501_v47, %v1975_v57  ;;  %v312_v53 = vpop.f32.mrb[17].mxu0 }
 0x14d   :  { %v313_v54 = vadd.f32 %v1975_v57, %v312_v53  ;;  %v1502_v55 = vpop.f32.mrb[18].mxu0  ;;  %1543 = vmatprep.mubr.bf16.mxu1 %v413_v46 }
 0x14e   :  { %v324_v56 = vadd.f32 %v1502_v55, %v1975_v57  ;;  %v315_v58 = vpop.f32.mrb[19].mxu0  ;;  %1544 = vmatmul.mubr.bf16.gmra.mrb[12].mxu1 %v414_v45  ;;  %v393_v0 = vmax.f32 %v321_v48, 0.0 }
 0x14f   :  { %v316_v63 = vadd.f32 %v1975_v57, %v315_v58  ;;  %v391_v2 = vmax.f32 %v313_v54, 0.0 }
 0x150   :  { %v394_v1 = vmax.f32 %v324_v56, 0.0 }
 0x151   :  { %v392_v3 = vmax.f32 %v316_v63, 0.0 }
 0x152   :  { %v416_v6 = vpack.c.bf16 %v394_v1, %v393_v0 }
 0x153   :  { %v415_v14 = vpack.c.bf16 %v392_v3, %v391_v2  ;;  %v1505_v17 = vpop.f32.mrb[20].mxu0 }
 0x154   :  { %v337_v19 = vadd.f32 %v1505_v17, %v1975_v57  ;;  %v328_v20 = vpop.f32.mrb[21].mxu0 }
 0x155   :  { %v329_v22 = vadd.f32 %v1975_v57, %v328_v20  ;;  %v1506_v23 = vpop.f32.mrb[22].mxu0  ;;  %1547 = vmatprep.mubr.bf16.mxu1 %v415_v14 }
 0x156   :  { %v340_v29 = vadd.f32 %v1506_v23, %v1975_v57  ;;  %v331_v30 = vpop.f32.mrb[23].mxu0  ;;  %1548 = vmatmul.mubr.bf16.gmra.mrb[16].mxu1 %v416_v6  ;;  %v397_v32 = vmax.f32 %v337_v19, 0.0 }
 0x157   :  { %v332_v31 = vadd.f32 %v1975_v57, %v331_v30  ;;  %v395_v34 = vmax.f32 %v329_v22, 0.0 }
 0x158   :  { %v398_v33 = vmax.f32 %v340_v29, 0.0 }
 0x159   :  { %v396_v37 = vmax.f32 %v332_v31, 0.0 }
 0x15a   :  { %v418_v38 = vpack.c.bf16 %v398_v33, %v397_v32 }
 0x15b   :  { %v417_v43 = vpack.c.bf16 %v396_v37, %v395_v34  ;;  %v1509_v44 = vpop.f32.mrb[24].mxu0  ;;  %v1690_v37 = vld [vmem:[#allocation5 + $0x78] sm:$0xff]  }
 0x15c   :  { %v353_v45 = vadd.f32 %v1509_v44, %v1975_v57  ;;  %v344_v46 = vpop.f32.mrb[25].mxu0  ;;  %1577 = vmatprep.subr.bf16.mxu0 %v1690_v37  ;;  %v1693_v44 = vld [vmem:[#allocation7 + $0x50] sm:$0xff]  }
 0x15d   :  { %v345_v47 = vadd.f32 %v1975_v57, %v344_v46  ;;  %v1510_v48 = vpop.f32.mrb[26].mxu0  ;;  %1551 = vmatprep.mubr.bf16.mxu1 %v417_v43  ;;  %1578 = vmatpush3.bf16.msra.mxu0 %v1690_v37  ;;  %v1692_v43 = vld [vmem:[#allocation7 + $0x48] sm:$0xff]  }
 0x15e   :  { %v356_v53 = vadd.f32 %v1510_v48, %v1975_v57  ;;  %v347_v54 = vpop.f32.mrb[27].mxu0  ;;  %1552 = vmatmul.mubr.bf16.gmra.mrb[20].mxu1 %v418_v38  ;;  %v401_v56 = vmax.f32 %v353_v45, 0.0  ;;  %v1691_v38 = vld [vmem:[#allocation7 + $0x40] sm:$0xff]   ;;  %v1696_v46 = vld [vmem:[#allocation7 + $0x68] sm:$0xff]  }
 0x15f   :  { %v348_v55 = vadd.f32 %v1975_v57, %v347_v54  ;;  %v399_v63 = vmax.f32 %v345_v47, 0.0  ;;  %1611 = vmatprep.subr.bf16.mxu1 %v1691_v38  ;;  %v1695_v45 = vld [vmem:[#allocation7 + $0x60] sm:$0xff]   ;;  %v1697_v47 = vld [vmem:[#allocation7 + $0x70] sm:$0xff]  }
 0x160   :  { %v402_v58 = vmax.f32 %v356_v53, 0.0  ;;  %1612 = vmatpush3.bf16.msra.mxu1 %v1691_v38  ;;  %v2012_v48 = vld [vmem:[%s2299_s4] ss:$0 sm:$0xff] }
 0x161   :  { %v400_v0 = vmax.f32 %v348_v55, 0.0  ;;  %1613 = vmatprep.subr.bf16.mxu1 %v1692_v43 }
 0x162   :  { %v420_v1 = vpack.c.bf16 %v402_v58, %v401_v56 }
 0x163   :  { %v419_v2 = vpack.c.bf16 %v400_v0, %v399_v63  ;;  %v1513_v3 = vpop.f32.mrb[28].mxu0 }
 0x164   :  { %v369_v6 = vadd.f32 %v1513_v3, %v1975_v57  ;;  %v360_v14 = vpop.f32.mrb[29].mxu0  ;;  %1614 = vmatpush3.bf16.msra.mxu1 %v1692_v43 }
 0x165   :  { %v361_v17 = vadd.f32 %v1975_v57, %v360_v14  ;;  %v1514_v19 = vpop.f32.mrb[30].mxu0  ;;  %1555 = vmatprep.mubr.bf16.mxu1 %v419_v2  ;;  %1615 = vmatprep.subr.bf16.mxu1 %v1693_v44 }
 0x166   :  { %v372_v20 = vadd.f32 %v1514_v19, %v1975_v57  ;;  %v363_v22 = vpop.f32.mrb[31].mxu0  ;;  %1556 = vmatmul.mubr.bf16.gmra.mrb[24].mxu1 %v420_v1  ;;  %v405_v29 = vmax.f32 %v369_v6, 0.0 }
 0x167   :  { %v364_v23 = vadd.f32 %v1975_v57, %v363_v22  ;;  %v403_v31 = vmax.f32 %v361_v17, 0.0  ;;  %v1694_v57 = vld [vmem:[#allocation7 + $0x58] sm:$0xff]  }
 0x168   :  { %v406_v30 = vmax.f32 %v372_v20, 0.0  ;;  %1616 = vmatpush3.bf16.msra.mxu1 %v1693_v44 }
 0x169   :  { %v404_v32 = vmax.f32 %v364_v23, 0.0  ;;  %1617 = vmatprep.subr.bf16.mxu1 %v1694_v57 }
 0x16a   :  { %v422_v33 = vpack.c.bf16 %v406_v30, %v405_v29 }
 0x16b   :  { %v421_v34 = vpack.c.bf16 %v404_v32, %v403_v31 }
 0x16c   :  { %1618 = vmatpush3.bf16.msra.mxu1 %v1694_v57 }
 0x16d   :  { %1559 = vmatprep.mubr.bf16.mxu1 %v421_v34  ;;  %1619 = vmatprep.subr.bf16.mxu1 %v1695_v45 }
 0x16e   :  { %1560 = vmatmul.mubr.bf16.gmra.mrb[28].mxu1 %v422_v33 }
 0x170   :  { %1620 = vmatpush3.bf16.msra.mxu1 %v1695_v45 }
 0x171   :  { %1621 = vmatprep.subr.bf16.mxu1 %v1696_v46 }
 0x174   :  { %1622 = vmatpush3.bf16.msra.mxu1 %v1696_v46 }
 0x175   :  { %1623 = vmatprep.subr.bf16.mxu1 %v1697_v47 }
 0x178   :  { %1624 = vmatpush3.bf16.msra.mxu1 %v1697_v47 }
 0x209   :  { %v1533_v53 = vpop.f32.mrb[0].mxu1 }
 0x20a   :  { %v537_v54 = vadd.f32 %v1533_v53, %v2012_v48  ;;  %v528_v55 = vpop.f32.mrb[1].mxu1 }
 0x20b   :  { %v529_v56 = vadd.f32 %v2012_v48, %v528_v55  ;;  %v1534_v58 = vpop.f32.mrb[2].mxu1 }
 0x20c   :  { %v540_v63 = vadd.f32 %v1534_v58, %v2012_v48  ;;  %v531_v0 = vpop.f32.mrb[3].mxu1  ;;  %v2022_v3 = vadd.f32 %v537_v54, %v1882_v11 }
 0x20d   :  { %v2018_v1 = vadd.f32 %v529_v56, %v1876_v4  ;;  %v532_v2 = vadd.f32 %v2012_v48, %v531_v0 }
 0x20e   :  { %v2025_v6 = vadd.f32 %v540_v63, %v1884_v12  ;;  %v689_v4 = vmax.f32 %v2022_v3, 0.0 }
 0x20f   :  { %v2028_v14 = vadd.f32 %v532_v2, %v1878_v5  ;;  %v687_v19 = vmax.f32 %v2018_v1, 0.0 }
 0x210   :  { %v690_v17 = vmax.f32 %v2025_v6, 0.0 }
 0x211   :  { %v688_v20 = vmax.f32 %v2028_v14, 0.0  ;;  %v1537_v22 = vpop.f32.mrb[4].mxu1 }
 0x212   :  { %v553_v23 = vadd.f32 %v1537_v22, %v2012_v48  ;;  %v544_v29 = vpop.f32.mrb[5].mxu1  ;;  %v720_v31 = vpack.c.bf16 %v690_v17, %v689_v4 }
 0x213   :  { %v545_v11 = vadd.f32 %v2012_v48, %v544_v29  ;;  %v1538_v30 = vpop.f32.mrb[6].mxu1  ;;  %v719_v12 = vpack.c.bf16 %v688_v20, %v687_v19 }
 0x214   :  { %v556_v5 = vadd.f32 %v1538_v30, %v2012_v48  ;;  %v547_v32 = vpop.f32.mrb[7].mxu1  ;;  %v2042_v37 = vadd.f32 %v553_v23, %v1890_v16 }
 0x215   :  { %v2038_v33 = vadd.f32 %v545_v11, %v1886_v13  ;;  %v548_v34 = vadd.f32 %v2012_v48, %v547_v32  ;;  %1579 = vmatprep.mubr.bf16.mxu0 %v719_v12 }
 0x216   :  { %v2045_v38 = vadd.f32 %v556_v5, %v1893_v18  ;;  %1580 = vmatmul.mubr.bf16.vlgmr.msra.gmra.mrb[32].mxu0 %v720_v31  ;;  %v693_v46 = vmax.f32 %v2042_v37, 0.0 }
 0x217   :  { %v2048_v43 = vadd.f32 %v548_v34, %v1888_v15  ;;  %v691_v57 = vmax.f32 %v2038_v33, 0.0 }
 0x218   :  { %v694_v44 = vmax.f32 %v2045_v38, 0.0 }
 0x219   :  { %v692_v13 = vmax.f32 %v2048_v43, 0.0  ;;  %v1541_v45 = vpop.f32.mrb[8].mxu1 }
 0x21a   :  { %v569_v47 = vadd.f32 %v1541_v45, %v2012_v48  ;;  %v560_v16 = vpop.f32.mrb[9].mxu1  ;;  %v722_v56 = vpack.c.bf16 %v694_v44, %v693_v46 }
 0x21b   :  { %v561_v53 = vadd.f32 %v2012_v48, %v560_v16  ;;  %v1542_v18 = vpop.f32.mrb[10].mxu1  ;;  %v721_v54 = vpack.c.bf16 %v692_v13, %v691_v57 }
 0x21c   :  { %v572_v55 = vadd.f32 %v1542_v18, %v2012_v48  ;;  %v563_v15 = vpop.f32.mrb[11].mxu1  ;;  %v2062_v0 = vadd.f32 %v569_v47, %v1906_v39 }
 0x21d   :  { %v2058_v58 = vadd.f32 %v561_v53, %v1896_v21  ;;  %v564_v63 = vadd.f32 %v2012_v48, %v563_v15  ;;  %1583 = vmatprep.mubr.bf16.mxu0 %v721_v54 }
 0x21e   :  { %v2065_v2 = vadd.f32 %v572_v55, %v1908_v40  ;;  %1584 = vmatmul.mubr.bf16.gmra.mrb[36].mxu0 %v722_v56  ;;  %v697_v4 = vmax.f32 %v2062_v0, 0.0 }
 0x21f   :  { %v2068_v17 = vadd.f32 %v564_v63, %v1900_v26  ;;  %v695_v20 = vmax.f32 %v2058_v58, 0.0 }
 0x220   :  { %v698_v19 = vmax.f32 %v2065_v2, 0.0 }
 0x221   :  { %v696_v21 = vmax.f32 %v2068_v17, 0.0  ;;  %v1545_v22 = vpop.f32.mrb[12].mxu1 }
 0x222   :  { %v585_v23 = vadd.f32 %v1545_v22, %v2012_v48  ;;  %v576_v39 = vpop.f32.mrb[13].mxu1  ;;  %v724_v12 = vpack.c.bf16 %v698_v19, %v697_v4 }
 0x223   :  { %v577_v29 = vadd.f32 %v2012_v48, %v576_v39  ;;  %v1546_v40 = vpop.f32.mrb[14].mxu1  ;;  %v723_v11 = vpack.c.bf16 %v696_v21, %v695_v20 }
 0x224   :  { %v588_v30 = vadd.f32 %v1546_v40, %v2012_v48  ;;  %v579_v26 = vpop.f32.mrb[15].mxu1  ;;  %v2082_v32 = vadd.f32 %v585_v23, %v1918_v49 }
 0x225   :  { %v2078_v31 = vadd.f32 %v577_v29, %v1910_v41  ;;  %v580_v5 = vadd.f32 %v2012_v48, %v579_v26  ;;  %1587 = vmatprep.mubr.bf16.mxu0 %v723_v11 }
 0x226   :  { %v2085_v34 = vadd.f32 %v588_v30, %v1920_v50  ;;  %1588 = vmatmul.mubr.bf16.gmra.mrb[40].mxu0 %v724_v12  ;;  %v701_v46 = vmax.f32 %v2082_v32, 0.0 }
 0x227   :  { %v2088_v44 = vadd.f32 %v580_v5, %v1912_v42  ;;  %v699_v13 = vmax.f32 %v2078_v31, 0.0 }
 0x228   :  { %v702_v57 = vmax.f32 %v2085_v34, 0.0 }
 0x229   :  { %v700_v41 = vmax.f32 %v2088_v44, 0.0  ;;  %v1549_v45 = vpop.f32.mrb[16].mxu1 }
 0x22a   :  { %v601_v47 = vadd.f32 %v1549_v45, %v2012_v48  ;;  %v592_v49 = vpop.f32.mrb[17].mxu1  ;;  %v726_v54 = vpack.c.bf16 %v702_v57, %v701_v46 }
 0x22b   :  { %v593_v16 = vadd.f32 %v2012_v48, %v592_v49  ;;  %v1550_v50 = vpop.f32.mrb[18].mxu1  ;;  %v725_v53 = vpack.c.bf16 %v700_v41, %v699_v13 }
 0x22c   :  { %v604_v18 = vadd.f32 %v1550_v50, %v2012_v48  ;;  %v595_v42 = vpop.f32.mrb[19].mxu1  ;;  %v2102_v56 = vadd.f32 %v601_v47, %v1930_v59 }
 0x22d   :  { %v2098_v55 = vadd.f32 %v593_v16, %v1922_v51  ;;  %v596_v15 = vadd.f32 %v2012_v48, %v595_v42  ;;  %1591 = vmatprep.mubr.bf16.mxu0 %v725_v53 }
 0x22e   :  { %v2105_v63 = vadd.f32 %v604_v18, %v1932_v60  ;;  %1592 = vmatmul.mubr.bf16.gmra.mrb[44].mxu0 %v726_v54  ;;  %v705_v4 = vmax.f32 %v2102_v56, 0.0 }
 0x22f   :  { %v2108_v19 = vadd.f32 %v596_v15, %v1924_v52  ;;  %v703_v21 = vmax.f32 %v2098_v55, 0.0 }
 0x230   :  { %v706_v20 = vmax.f32 %v2105_v63, 0.0 }
 0x231   :  { %v704_v51 = vmax.f32 %v2108_v19, 0.0  ;;  %v1553_v22 = vpop.f32.mrb[20].mxu1 }
 0x232   :  { %v617_v23 = vadd.f32 %v1553_v22, %v2012_v48  ;;  %v608_v59 = vpop.f32.mrb[21].mxu1  ;;  %v728_v11 = vpack.c.bf16 %v706_v20, %v705_v4 }
 0x233   :  { %v609_v39 = vadd.f32 %v2012_v48, %v608_v59  ;;  %v1554_v60 = vpop.f32.mrb[22].mxu1  ;;  %v727_v29 = vpack.c.bf16 %v704_v51, %v703_v21 }
 0x234   :  { %v620_v40 = vadd.f32 %v1554_v60, %v2012_v48  ;;  %v611_v52 = vpop.f32.mrb[23].mxu1  ;;  %v2122_v12 = vadd.f32 %v617_v23, %v1942_v7 }
 0x235   :  { %v2118_v30 = vadd.f32 %v609_v39, %v1934_v61  ;;  %v612_v26 = vadd.f32 %v2012_v48, %v611_v52  ;;  %1595 = vmatprep.mubr.bf16.mxu0 %v727_v29 }
 0x236   :  { %v2125_v5 = vadd.f32 %v620_v40, %v1944_v8  ;;  %1596 = vmatmul.mubr.bf16.gmra.mrb[48].mxu0 %v728_v11  ;;  %v709_v46 = vmax.f32 %v2122_v12, 0.0 }
 0x237   :  { %v2128_v57 = vadd.f32 %v612_v26, %v1936_v62  ;;  %v707_v41 = vmax.f32 %v2118_v30, 0.0 }
 0x238   :  { %v710_v13 = vmax.f32 %v2125_v5, 0.0 }
 0x239   :  { %v708_v61 = vmax.f32 %v2128_v57, 0.0  ;;  %v1557_v45 = vpop.f32.mrb[24].mxu1 }
 0x23a   :  { %v633_v47 = vadd.f32 %v1557_v45, %v2012_v48  ;;  %v624_v7 = vpop.f32.mrb[25].mxu1  ;;  %v730_v53 = vpack.c.bf16 %v710_v13, %v709_v46 }
 0x23b   :  { %v625_v49 = vadd.f32 %v2012_v48, %v624_v7  ;;  %v1558_v8 = vpop.f32.mrb[26].mxu1  ;;  %v729_v16 = vpack.c.bf16 %v708_v61, %v707_v41 }
 0x23c   :  { %v636_v50 = vadd.f32 %v1558_v8, %v2012_v48  ;;  %v627_v62 = vpop.f32.mrb[27].mxu1  ;;  %v2142_v54 = vadd.f32 %v633_v47, %v1954_v24 }
 0x23d   :  { %v2138_v18 = vadd.f32 %v625_v49, %v1946_v9  ;;  %v628_v42 = vadd.f32 %v2012_v48, %v627_v62  ;;  %1599 = vmatprep.mubr.bf16.mxu0 %v729_v16 }
 0x23e   :  { %v2145_v15 = vadd.f32 %v636_v50, %v1956_v25  ;;  %1600 = vmatmul.mubr.bf16.gmra.mrb[52].mxu0 %v730_v53  ;;  %v713_v4 = vmax.f32 %v2142_v54, 0.0 }
 0x23f   :  { %v2148_v20 = vadd.f32 %v628_v42, %v1948_v10  ;;  %v711_v51 = vmax.f32 %v2138_v18, 0.0 }
 0x240   :  { %v714_v21 = vmax.f32 %v2145_v15, 0.0 }
 0x241   :  { %v712_v9 = vmax.f32 %v2148_v20, 0.0  ;;  %v1561_v22 = vpop.f32.mrb[28].mxu1 }
 0x242   :  { %v649_v23 = vadd.f32 %v1561_v22, %v2012_v48  ;;  %v640_v24 = vpop.f32.mrb[29].mxu1  ;;  %v732_v29 = vpack.c.bf16 %v714_v21, %v713_v4 }
 0x243   :  { %v641_v59 = vadd.f32 %v2012_v48, %v640_v24  ;;  %v1562_v25 = vpop.f32.mrb[30].mxu1  ;;  %v731_v39 = vpack.c.bf16 %v712_v9, %v711_v51 }
 0x244   :  { %v652_v60 = vadd.f32 %v1562_v25, %v2012_v48  ;;  %v643_v10 = vpop.f32.mrb[31].mxu1  ;;  %v2162_v11 = vadd.f32 %v649_v23, %v1966_v35  ;;  %v1698_v35 = vld [vmem:[#allocation7 + $0x78] sm:$0xff]  }
 0x245   :  { %v2158_v40 = vadd.f32 %v641_v59, %v1958_v27  ;;  %v644_v52 = vadd.f32 %v2012_v48, %v643_v10  ;;  %1603 = vmatprep.mubr.bf16.mxu0 %v731_v39  ;;  %1625 = vmatprep.subr.bf16.mxu1 %v1698_v35 }
 0x246   :  { %v2165_v26 = vadd.f32 %v652_v60, %v1968_v36  ;;  %1604 = vmatmul.mubr.bf16.gmra.mrb[56].mxu0 %v732_v29  ;;  %v717_v45 = vmax.f32 %v2162_v11, 0.0  ;;  %1626 = vmatpush3.bf16.msra.mxu1 %v1698_v35 }
 0x247   :  { %v2168_v13 = vadd.f32 %v644_v52, %v1960_v28  ;;  %v715_v61 = vmax.f32 %v2158_v40, 0.0  ;;  %v2177_v28 = vld [vmem:[%s2297_s2 + $0x1] ss:$0 sm:$0xff] }
 0x248   :  { %v718_v41 = vmax.f32 %v2165_v26, 0.0 }
 0x249   :  { %v716_v27 = vmax.f32 %v2168_v13, 0.0 }
 0x24a   :  { %v734_v46 = vpack.c.bf16 %v718_v41, %v717_v45 }
 0x24b   :  { %v733_v48 = vpack.c.bf16 %v716_v27, %v715_v61 }
 0x24d   :  { %1607 = vmatprep.mubr.bf16.mxu0 %v733_v48 }
 0x24e   :  { %1608 = vmatmul.mubr.bf16.gmra.mrb[60].mxu0 %v734_v46 }
 0x2e9   :  { %v1581_v36 = vpop.f32.mrb[32].mxu0 }
 0x2ea   :  { %v851_v47 = vadd.f32 %v1581_v36, %v2177_v28  ;;  %v842_v7 = vpop.f32.mrb[33].mxu0 }
 0x2eb   :  { %v843_v49 = vadd.f32 %v2177_v28, %v842_v7  ;;  %v1582_v8 = vpop.f32.mrb[34].mxu0 }
 0x2ec   :  { %v854_v16 = vadd.f32 %v1582_v8, %v2177_v28  ;;  %v845_v50 = vpop.f32.mrb[35].mxu0  ;;  %v971_v53 = vmax.f32 %v851_v47, 0.0 }
 0x2ed   :  { %v846_v62 = vadd.f32 %v2177_v28, %v845_v50  ;;  %v969_v21 = vmax.f32 %v843_v49, 0.0 }
 0x2ee   :  { %v972_v42 = vmax.f32 %v854_v16, 0.0 }
 0x2ef   :  { %v970_v51 = vmax.f32 %v846_v62, 0.0 }
 0x2f0   :  { %v1002_v9 = vpack.c.bf16 %v972_v42, %v971_v53 }
 0x2f1   :  { %v1001_v22 = vpack.c.bf16 %v970_v51, %v969_v21  ;;  %v1585_v4 = vpop.f32.mrb[36].mxu0 }
 0x2f2   :  { %v867_v23 = vadd.f32 %v1585_v4, %v2177_v28  ;;  %v858_v24 = vpop.f32.mrb[37].mxu0 }
 0x2f3   :  { %v859_v59 = vadd.f32 %v2177_v28, %v858_v24  ;;  %v1586_v25 = vpop.f32.mrb[38].mxu0  ;;  %1627 = vmatprep.mubr.bf16.mxu1 %v1001_v22 }
 0x2f4   :  { %v870_v39 = vadd.f32 %v1586_v25, %v2177_v28  ;;  %v861_v60 = vpop.f32.mrb[39].mxu0  ;;  %1628 = vmatmul.mubr.bf16.vlgmr.msra.gmra.mrb[32].mxu1 %v1002_v9  ;;  %v975_v29 = vmax.f32 %v867_v23, 0.0 }
 0x2f5   :  { %v862_v10 = vadd.f32 %v2177_v28, %v861_v60  ;;  %v973_v41 = vmax.f32 %v859_v59, 0.0 }
 0x2f6   :  { %v976_v52 = vmax.f32 %v870_v39, 0.0 }
 0x2f7   :  { %v974_v61 = vmax.f32 %v862_v10, 0.0 }
 0x2f8   :  { %v1004_v27 = vpack.c.bf16 %v976_v52, %v975_v29 }
 0x2f9   :  { %v1003_v45 = vpack.c.bf16 %v974_v61, %v973_v41  ;;  %v1589_v48 = vpop.f32.mrb[40].mxu0 }
 0x2fa   :  { %v883_v46 = vadd.f32 %v1589_v48, %v2177_v28  ;;  %v874_v35 = vpop.f32.mrb[41].mxu0 }
 0x2fb   :  { %v875_v36 = vadd.f32 %v2177_v28, %v874_v35  ;;  %v1590_v47 = vpop.f32.mrb[42].mxu0  ;;  %1631 = vmatprep.mubr.bf16.mxu1 %v1003_v45 }
 0x2fc   :  { %v886_v7 = vadd.f32 %v1590_v47, %v2177_v28  ;;  %v877_v49 = vpop.f32.mrb[43].mxu0  ;;  %1632 = vmatmul.mubr.bf16.gmra.mrb[36].mxu1 %v1004_v27  ;;  %v979_v16 = vmax.f32 %v883_v46, 0.0 }
 0x2fd   :  { %v878_v8 = vadd.f32 %v2177_v28, %v877_v49  ;;  %v977_v62 = vmax.f32 %v875_v36, 0.0 }
 0x2fe   :  { %v980_v50 = vmax.f32 %v886_v7, 0.0 }
 0x2ff   :  { %v978_v53 = vmax.f32 %v878_v8, 0.0 }
 0x300   :  { %v1006_v42 = vpack.c.bf16 %v980_v50, %v979_v16 }
 0x301   :  { %v1005_v21 = vpack.c.bf16 %v978_v53, %v977_v62  ;;  %v1593_v51 = vpop.f32.mrb[44].mxu0 }
 0x302   :  { %v899_v9 = vadd.f32 %v1593_v51, %v2177_v28  ;;  %v890_v22 = vpop.f32.mrb[45].mxu0 }
 0x303   :  { %v891_v4 = vadd.f32 %v2177_v28, %v890_v22  ;;  %v1594_v23 = vpop.f32.mrb[46].mxu0  ;;  %1635 = vmatprep.mubr.bf16.mxu1 %v1005_v21 }
 0x304   :  { %v902_v24 = vadd.f32 %v1594_v23, %v2177_v28  ;;  %v893_v59 = vpop.f32.mrb[47].mxu0  ;;  %1636 = vmatmul.mubr.bf16.gmra.mrb[40].mxu1 %v1006_v42  ;;  %v983_v39 = vmax.f32 %v899_v9, 0.0 }
 0x305   :  { %v894_v25 = vadd.f32 %v2177_v28, %v893_v59  ;;  %v981_v10 = vmax.f32 %v891_v4, 0.0 }
 0x306   :  { %v984_v60 = vmax.f32 %v902_v24, 0.0 }
 0x307   :  { %v982_v29 = vmax.f32 %v894_v25, 0.0 }
 0x308   :  { %v1008_v52 = vpack.c.bf16 %v984_v60, %v983_v39 }
 0x309   :  { %v1007_v41 = vpack.c.bf16 %v982_v29, %v981_v10  ;;  %v1597_v61 = vpop.f32.mrb[48].mxu0 }
 0x30a   :  { %v915_v27 = vadd.f32 %v1597_v61, %v2177_v28  ;;  %v906_v45 = vpop.f32.mrb[49].mxu0 }
 0x30b   :  { %v907_v48 = vadd.f32 %v2177_v28, %v906_v45  ;;  %v1598_v46 = vpop.f32.mrb[50].mxu0  ;;  %1639 = vmatprep.mubr.bf16.mxu1 %v1007_v41 }
 0x30c   :  { %v918_v35 = vadd.f32 %v1598_v46, %v2177_v28  ;;  %v909_v36 = vpop.f32.mrb[51].mxu0  ;;  %1640 = vmatmul.mubr.bf16.gmra.mrb[44].mxu1 %v1008_v52  ;;  %v987_v7 = vmax.f32 %v915_v27, 0.0 }
 0x30d   :  { %v910_v47 = vadd.f32 %v2177_v28, %v909_v36  ;;  %v985_v8 = vmax.f32 %v907_v48, 0.0 }
 0x30e   :  { %v988_v49 = vmax.f32 %v918_v35, 0.0 }
 0x30f   :  { %v986_v16 = vmax.f32 %v910_v47, 0.0 }
 0x310   :  { %v1010_v50 = vpack.c.bf16 %v988_v49, %v987_v7 }
 0x311   :  { %v1009_v62 = vpack.c.bf16 %v986_v16, %v985_v8  ;;  %v1601_v53 = vpop.f32.mrb[52].mxu0 }
 0x312   :  { %v931_v42 = vadd.f32 %v1601_v53, %v2177_v28  ;;  %v922_v21 = vpop.f32.mrb[53].mxu0 }
 0x313   :  { %v923_v51 = vadd.f32 %v2177_v28, %v922_v21  ;;  %v1602_v9 = vpop.f32.mrb[54].mxu0  ;;  %1643 = vmatprep.mubr.bf16.mxu1 %v1009_v62 }
 0x314   :  { %v934_v22 = vadd.f32 %v1602_v9, %v2177_v28  ;;  %v925_v4 = vpop.f32.mrb[55].mxu0  ;;  %1644 = vmatmul.mubr.bf16.gmra.mrb[48].mxu1 %v1010_v50  ;;  %v991_v24 = vmax.f32 %v931_v42, 0.0 }
 0x315   :  { %v926_v23 = vadd.f32 %v2177_v28, %v925_v4  ;;  %v989_v25 = vmax.f32 %v923_v51, 0.0 }
 0x316   :  { %v992_v59 = vmax.f32 %v934_v22, 0.0 }
 0x317   :  { %v990_v39 = vmax.f32 %v926_v23, 0.0 }
 0x318   :  { %v1012_v60 = vpack.c.bf16 %v992_v59, %v991_v24 }
 0x319   :  { %v1011_v10 = vpack.c.bf16 %v990_v39, %v989_v25  ;;  %v1605_v29 = vpop.f32.mrb[56].mxu0  ;;  %v2214_v39 = vld [vmem:[%s2299_s4 + $0x1] ss:$0 sm:$0xff]  ;;  %s1800_s4 = smov [#allocation8]  }
 0x31a   :  { %v947_v52 = vadd.f32 %v1605_v29, %v2177_v28  ;;  %v938_v41 = vpop.f32.mrb[57].mxu0  ;;  %s1320_s12 = sshll.u32 %s1800_s4, 4  ;;  %s1321_s12 = int_to_ptr.vmem [resolvable:$true] %s1320_s12 }
 0x31b   :  { %v939_v61 = vadd.f32 %v2177_v28, %v938_v41  ;;  %v1606_v27 = vpop.f32.mrb[58].mxu0  ;;  %1647 = vmatprep.mubr.bf16.mxu1 %v1011_v10  ;;  %s1765_s13 = scalar_lea.vmem %s1321_s12, 4096  ;;  %p1770_p11 = scmp.lt.s32.totalorder %s1321_s12, %s1321_s12 }
 0x31c   :  { %v950_v45 = vadd.f32 %v1606_v27, %v2177_v28  ;;  %v941_v48 = vpop.f32.mrb[59].mxu0  ;;  %1648 = vmatmul.mubr.bf16.gmra.mrb[52].mxu1 %v1012_v60  ;;  %v995_v35 = vmax.f32 %v947_v52, 0.0  ;;  %p1766_p10 = scmp.ne.s32.totalorder %s1321_s12, %s1765_s13  ;;  %p1771_p12 = scmp.lt.s32.totalorder %s1765_s13, %s1765_s13 }
 0x31d   :  { %v942_v46 = vadd.f32 %v2177_v28, %v941_v48  ;;  %v993_v47 = vmax.f32 %v939_v61, 0.0 }
 0x31e   :  { %v996_v36 = vmax.f32 %v950_v45, 0.0  ;;  %p1772_p13 = por %p1771_p12, %p1770_p11 }
 0x31f   :  { %v994_v7 = vmax.f32 %v942_v46, 0.0 }
 0x320   :  { %v1014_v49 = vpack.c.bf16 %v996_v36, %v995_v35  ;;  %p1773_p0 = pnand %p1772_p13, %p1766_p10 }
 0x321   :  { %v1013_v8 = vpack.c.bf16 %v994_v7, %v993_v47  ;;  %v1609_v16 = vpop.f32.mrb[60].mxu0 }
 0x322   :  { %v963_v50 = vadd.f32 %v1609_v16, %v2177_v28  ;;  %v954_v62 = vpop.f32.mrb[61].mxu0 }
 0x323   :  { %v955_v53 = vadd.f32 %v2177_v28, %v954_v62  ;;  %v1610_v42 = vpop.f32.mrb[62].mxu0  ;;  %1651 = vmatprep.mubr.bf16.mxu1 %v1013_v8 }
 0x324   :  { %v966_v21 = vadd.f32 %v1610_v42, %v2177_v28  ;;  %v957_v51 = vpop.f32.mrb[63].mxu0  ;;  %1652 = vmatmul.mubr.bf16.gmra.mrb[56].mxu1 %v1014_v49  ;;  %v999_v22 = vmax.f32 %v963_v50, 0.0 }
 0x325   :  { %v958_v9 = vadd.f32 %v2177_v28, %v957_v51  ;;  %v997_v23 = vmax.f32 %v955_v53, 0.0 }
 0x326   :  { %v1000_v4 = vmax.f32 %v966_v21, 0.0 }
 0x327   :  { %v998_v24 = vmax.f32 %v958_v9, 0.0 }
 0x328   :  { %v1016_v59 = vpack.c.bf16 %v1000_v4, %v999_v22 }
 0x329   :  { %v1015_v25 = vpack.c.bf16 %v998_v24, %v997_v23 }
 0x32b   :  { %1655 = vmatprep.mubr.bf16.mxu1 %v1015_v25 }
 0x32c   :  { %1656 = vmatmul.mubr.bf16.gmra.mrb[60].mxu1 %v1016_v59 }
 0x3c7   :  { %v1629_v60 = vpop.f32.mrb[32].mxu1 }
 0x3c8   :  { %v1133_v10 = vadd.f32 %v1629_v60, %v2214_v39  ;;  %v1124_v29 = vpop.f32.mrb[33].mxu1 }
 0x3c9   :  { %v1125_v52 = vadd.f32 %v2214_v39, %v1124_v29  ;;  %v1630_v28 = vpop.f32.mrb[34].mxu1 }
 0x3ca   :  { %v1253_v41 = vadd.f32 %v1133_v10, %v2022_v3  ;;  %v1136_v61 = vadd.f32 %v1630_v28, %v2214_v39  ;;  %v1127_v27 = vpop.f32.mrb[35].mxu1 }
 0x3cb   :  { %v1251_v45 = vadd.f32 %v1125_v52, %v2018_v1  ;;  %v1128_v48 = vadd.f32 %v2214_v39, %v1127_v27 }
 0x3cc   :  { %1285 = vst [vmem:[#allocation8 + $0x10] sm:$0xff] %v1253_v41  ;;  %v1254_v46 = vadd.f32 %v1136_v61, %v2025_v6 }
 0x3cd   :  { %1283 = vst [vmem:[#allocation8] sm:$0xff] %v1251_v45  ;;  %v1252_v35 = vadd.f32 %v1128_v48, %v2028_v14 }
 0x3ce   :  { %1286 = vst [vmem:[#allocation8 + $0x18] sm:$0xff] %v1254_v46 }
 0x3cf   :  { %1284 = vst [vmem:[#allocation8 + $0x8] sm:$0xff] %v1252_v35  ;;  %v1633_v36 = vpop.f32.mrb[36].mxu1 }
 0x3d0   :  { %v1149_v47 = vadd.f32 %v1633_v36, %v2214_v39  ;;  %v1140_v7 = vpop.f32.mrb[37].mxu1 }
 0x3d1   :  { %v1141_v3 = vadd.f32 %v2214_v39, %v1140_v7  ;;  %v1634_v49 = vpop.f32.mrb[38].mxu1 }
 0x3d2   :  { %v1257_v8 = vadd.f32 %v1149_v47, %v2042_v37  ;;  %v1152_v1 = vadd.f32 %v1634_v49, %v2214_v39  ;;  %v1143_v16 = vpop.f32.mrb[39].mxu1 }
 0x3d3   :  { %v1255_v50 = vadd.f32 %v1141_v3, %v2038_v33  ;;  %v1144_v6 = vadd.f32 %v2214_v39, %v1143_v16 }
 0x3d4   :  { %1289 = vst [vmem:[#allocation8 + $0x30] sm:$0xff] %v1257_v8  ;;  %v1258_v14 = vadd.f32 %v1152_v1, %v2045_v38 }
 0x3d5   :  { %1287 = vst [vmem:[#allocation8 + $0x20] sm:$0xff] %v1255_v50  ;;  %v1256_v62 = vadd.f32 %v1144_v6, %v2048_v43 }
 0x3d6   :  { %1290 = vst [vmem:[#allocation8 + $0x38] sm:$0xff] %v1258_v14 }
 0x3d7   :  { %1288 = vst [vmem:[#allocation8 + $0x28] sm:$0xff] %v1256_v62  ;;  %v1637_v53 = vpop.f32.mrb[40].mxu1 }
 0x3d8   :  { %v1165_v42 = vadd.f32 %v1637_v53, %v2214_v39  ;;  %v1156_v21 = vpop.f32.mrb[41].mxu1 }
 0x3d9   :  { %v1157_v37 = vadd.f32 %v2214_v39, %v1156_v21  ;;  %v1638_v51 = vpop.f32.mrb[42].mxu1 }
 0x3da   :  { %v1261_v9 = vadd.f32 %v1165_v42, %v2062_v0  ;;  %v1168_v33 = vadd.f32 %v1638_v51, %v2214_v39  ;;  %v1159_v22 = vpop.f32.mrb[43].mxu1 }
 0x3db   :  { %v1259_v4 = vadd.f32 %v1157_v37, %v2058_v58  ;;  %v1160_v38 = vadd.f32 %v2214_v39, %v1159_v22 }
 0x3dc   :  { %1293 = vst [vmem:[#allocation8 + $0x50] sm:$0xff] %v1261_v9  ;;  %v1262_v43 = vadd.f32 %v1168_v33, %v2065_v2 }
 0x3dd   :  { %1291 = vst [vmem:[#allocation8 + $0x40] sm:$0xff] %v1259_v4  ;;  %v1260_v23 = vadd.f32 %v1160_v38, %v2068_v17 }
 0x3de   :  { %1294 = vst [vmem:[#allocation8 + $0x58] sm:$0xff] %v1262_v43 }
 0x3df   :  { %1292 = vst [vmem:[#allocation8 + $0x48] sm:$0xff] %v1260_v23  ;;  %v1641_v24 = vpop.f32.mrb[44].mxu1 }
 0x3e0   :  { %v1181_v59 = vadd.f32 %v1641_v24, %v2214_v39  ;;  %v1172_v25 = vpop.f32.mrb[45].mxu1 }
 0x3e1   :  { %v1173_v0 = vadd.f32 %v2214_v39, %v1172_v25  ;;  %v1642_v60 = vpop.f32.mrb[46].mxu1 }
 0x3e2   :  { %v1265_v10 = vadd.f32 %v1181_v59, %v2082_v32  ;;  %v1184_v58 = vadd.f32 %v1642_v60, %v2214_v39  ;;  %v1175_v29 = vpop.f32.mrb[47].mxu1 }
 0x3e3   :  { %v1263_v52 = vadd.f32 %v1173_v0, %v2078_v31  ;;  %v1176_v2 = vadd.f32 %v2214_v39, %v1175_v29 }
 0x3e4   :  { %1297 = vst [vmem:[#allocation8 + $0x70] sm:$0xff] %v1265_v10  ;;  %v1266_v17 = vadd.f32 %v1184_v58, %v2085_v34 }
 0x3e5   :  { %1295 = vst [vmem:[#allocation8 + $0x60] sm:$0xff] %v1263_v52  ;;  %v1264_v28 = vadd.f32 %v1176_v2, %v2088_v44 }
 0x3e6   :  { %1298 = vst [vmem:[#allocation8 + $0x78] sm:$0xff] %v1266_v17 }
 0x3e7   :  { %1296 = vst [vmem:[#allocation8 + $0x68] sm:$0xff] %v1264_v28  ;;  %v1645_v41 = vpop.f32.mrb[48].mxu1 }
 0x3e8   :  { %v1197_v61 = vadd.f32 %v1645_v41, %v2214_v39  ;;  %v1188_v27 = vpop.f32.mrb[49].mxu1 }
 0x3e9   :  { %v1189_v32 = vadd.f32 %v2214_v39, %v1188_v27  ;;  %v1646_v45 = vpop.f32.mrb[50].mxu1 }
 0x3ea   :  { %v1269_v48 = vadd.f32 %v1197_v61, %v2102_v56  ;;  %v1200_v31 = vadd.f32 %v1646_v45, %v2214_v39  ;;  %v1191_v46 = vpop.f32.mrb[51].mxu1 }
 0x3eb   :  { %v1267_v35 = vadd.f32 %v1189_v32, %v2098_v55  ;;  %v1192_v34 = vadd.f32 %v2214_v39, %v1191_v46 }
 0x3ec   :  { %1301 = vst [vmem:[#allocation8 + $0x90] sm:$0xff] %v1269_v48  ;;  %v1270_v44 = vadd.f32 %v1200_v31, %v2105_v63 }
 0x3ed   :  { %1299 = vst [vmem:[#allocation8 + $0x80] sm:$0xff] %v1267_v35  ;;  %v1268_v36 = vadd.f32 %v1192_v34, %v2108_v19 }
 0x3ee   :  { %1302 = vst [vmem:[#allocation8 + $0x98] sm:$0xff] %v1270_v44 }
 0x3ef   :  { %1300 = vst [vmem:[#allocation8 + $0x88] sm:$0xff] %v1268_v36  ;;  %v1649_v47 = vpop.f32.mrb[52].mxu1 }
 0x3f0   :  { %v1213_v7 = vadd.f32 %v1649_v47, %v2214_v39  ;;  %v1204_v3 = vpop.f32.mrb[53].mxu1 }
 0x3f1   :  { %v1205_v56 = vadd.f32 %v2214_v39, %v1204_v3  ;;  %v1650_v49 = vpop.f32.mrb[54].mxu1 }
 0x3f2   :  { %v1273_v8 = vadd.f32 %v1213_v7, %v2122_v12  ;;  %v1216_v55 = vadd.f32 %v1650_v49, %v2214_v39  ;;  %v1207_v1 = vpop.f32.mrb[55].mxu1 }
 0x3f3   :  { %v1271_v16 = vadd.f32 %v1205_v56, %v2118_v30  ;;  %v1208_v63 = vadd.f32 %v2214_v39, %v1207_v1 }
 0x3f4   :  { %1305 = vst [vmem:[#allocation8 + $0xb0] sm:$0xff] %v1273_v8  ;;  %v1274_v19 = vadd.f32 %v1216_v55, %v2125_v5 }
 0x3f5   :  { %1303 = vst [vmem:[#allocation8 + $0xa0] sm:$0xff] %v1271_v16  ;;  %v1272_v50 = vadd.f32 %v1208_v63, %v2128_v57 }
 0x3f6   :  { %1306 = vst [vmem:[#allocation8 + $0xb8] sm:$0xff] %v1274_v19 }
 0x3f7   :  { %1304 = vst [vmem:[#allocation8 + $0xa8] sm:$0xff] %v1272_v50  ;;  %v1653_v6 = vpop.f32.mrb[56].mxu1 }
 0x3f8   :  { %v1229_v14 = vadd.f32 %v1653_v6, %v2214_v39  ;;  %v1220_v62 = vpop.f32.mrb[57].mxu1 }
 0x3f9   :  { %v1221_v12 = vadd.f32 %v2214_v39, %v1220_v62  ;;  %v1654_v53 = vpop.f32.mrb[58].mxu1 }
 0x3fa   :  { %v1277_v42 = vadd.f32 %v1229_v14, %v2142_v54  ;;  %v1232_v30 = vadd.f32 %v1654_v53, %v2214_v39  ;;  %v1223_v21 = vpop.f32.mrb[59].mxu1 }
 0x3fb   :  { %v1275_v37 = vadd.f32 %v1221_v12, %v2138_v18  ;;  %v1224_v5 = vadd.f32 %v2214_v39, %v1223_v21 }
 0x3fc   :  { %1309 = vst [vmem:[#allocation8 + $0xd0] sm:$0xff] %v1277_v42  ;;  %v1278_v57 = vadd.f32 %v1232_v30, %v2145_v15 }
 0x3fd   :  { %1307 = vst [vmem:[#allocation8 + $0xc0] sm:$0xff] %v1275_v37  ;;  %v1276_v51 = vadd.f32 %v1224_v5, %v2148_v20 }
 0x3fe   :  { %1310 = vst [vmem:[#allocation8 + $0xd8] sm:$0xff] %v1278_v57 }
 0x3ff   :  { %1308 = vst [vmem:[#allocation8 + $0xc8] sm:$0xff] %v1276_v51  ;;  %v1657_v9 = vpop.f32.mrb[60].mxu1 }
 0x400   :  { %v1245_v33 = vadd.f32 %v1657_v9, %v2214_v39  ;;  %v1236_v22 = vpop.f32.mrb[61].mxu1 }
 0x401   :  { %v1237_v54 = vadd.f32 %v2214_v39, %v1236_v22  ;;  %v1658_v4 = vpop.f32.mrb[62].mxu1 }
 0x402   :  { %v1281_v38 = vadd.f32 %v1245_v33, %v2162_v11  ;;  %v1248_v18 = vadd.f32 %v1658_v4, %v2214_v39  ;;  %v1239_v43 = vpop.f32.mrb[63].mxu1 }
 0x403   :  { %v1279_v15 = vadd.f32 %v1237_v54, %v2158_v40  ;;  %v1240_v20 = vadd.f32 %v2214_v39, %v1239_v43 }
 0x404   :  { %1313 = vst [vmem:[#allocation8 + $0xf0] sm:$0xff] %v1281_v38  ;;  %v1282_v23 = vadd.f32 %v1248_v18, %v2165_v26 }
 0x405   :  { %1311 = vst [vmem:[#allocation8 + $0xe0] sm:$0xff] %v1279_v15  ;;  %v1280_v24 = vadd.f32 %v1240_v20, %v2168_v13 }
 0x406   :  { %1314 = vst [vmem:[#allocation8 + $0xf8] sm:$0xff] %v1282_v23 }
 0x407   :  { %1312 = vst [vmem:[#allocation8 + $0xe8] sm:$0xff] %v1280_v24 }
 0x408   :  { %1776 = shalt.err (!%p1773_p0)
}
 0x409   :  { %s1777_s16 = scalar_lea.hbm %s2300_s5, 4096 }
 0x40a   :  { %p1778_p1 = scmp.ne.s32.totalorder %s2300_s5, %s1777_s16  ;;  %p1781_p2 = scmp.lt.u32.totalorder %s1777_s16, %s2300_s5 }
 0x40c   :  { %p1783_p3 = pnand %p1781_p2, %p1778_p1 }
 0x40e   :  { %1786 = shalt.err (!%p1783_p3)
}
 0x40f   :  { %1326 = dma.vmem_to_hbm [thread:$0]  %s1321_s12, 4096, %s2300_s5, [#allocation4], %s1797_s1, %s1797_s1, %s1798_s17  }
 0x410   :  { %1791 = dma.done.wait [#allocation4], 4096  }
 0x411   :  { %1792 = vsyncadd [#allocation4], 4294963200 }
 0x412   :  { %1330 = vsyncpa [#allocation3], 1 }
 0x413   :  { %1331 = vsyncpa [#allocation6], 1 }
 0x414   :  { %1332 = vsyncpa [#allocation4], 1 }

// kernel: tpu_custom_call.1
= control target key start
LH: loop header
LB: loop body
LE: loop exit
PB: predicated region body
PF: predicated region fallthrough
CT: control target
= control target key end

     0   :  { %10 = vsyncpa [#allocation3], 0  ;;  %s2295_s0 = inlined_call_operand.hbm [shape: f32[256,128], index: 0, kind: input, shape index: {}]   ;;  %s2296_s1 = inlined_call_operand.hbm [shape: bf16[2,128,128], index: 1, kind: input, shape index: {}]   ;;  %s2297_s2 = inlined_call_operand.vmem [shape: f32[2,1,128], index: 2, kind: input, shape index: {}]   ;;  %s2298_s3 = inlined_call_operand.hbm [shape: bf16[2,128,128], index: 3, kind: input, shape index: {}]   ;;  %s2299_s4 = inlined_call_operand.vmem [shape: f32[2,1,128], index: 4, kind: input, shape index: {}]   ;;  %s2300_s5 = inlined_call_operand.hbm [shape: f32[256,128], index: 5, kind: output, shape index: {}]  }
   0x1   :  { %11 = vsyncpa [#allocation6], 0 }
   0x2   :  { %12 = vsyncpa [#allocation4], 0  ;;  %s1793_s18 = smov [#allocation5]   ;;  %s1699_s22 = scalar_lea.hbm %s2296_s1, 2048 }
   0x3   :  { %s30_s19 = sshll.u32 %s1793_s18, 4  ;;  %p1700_p0 = scmp.ne.s32.totalorder %s2296_s1, %s1699_s22  ;;  %s31_s19 = int_to_ptr.vmem [resolvable:$true] %s30_s19 }
   0x4   :  { %p1703_p1 = scmp.lt.u32.totalorder %s1699_s22, %s2296_s1 }
   0x6   :  { %p1705_p2 = pnand %p1703_p1, %p1700_p0 }
   0x8   :  { %1708 = shalt.err (!%p1705_p2)
}
   0x9   :  { %s1709_s27 = scalar_lea.vmem %s31_s19, 2048  ;;  %p1714_p4 = scmp.lt.s32.totalorder %s31_s19, %s31_s19 }
   0xa   :  { %p1710_p3 = scmp.ne.s32.totalorder %s31_s19, %s1709_s27  ;;  %p1715_p5 = scmp.lt.s32.totalorder %s1709_s27, %s1709_s27 }
   0xc   :  { %p1716_p6 = por %p1715_p5, %p1714_p4 }
   0xe   :  { %p1717_p7 = pnand %p1716_p6, %p1710_p3 }
  0x10   :  { %1720 = shalt.err (!%p1717_p7)
}
  0x11   :  { %s1794_s28 = smov 64   ;;  %s1795_s29 = smov 4  }
  0x12   :  { %36 = dma.hbm_to_vmem [thread:$0]  %s2296_s1, 2048, %s31_s19, [#allocation6], %s1794_s28, %s1794_s28, %s1795_s29  }
  0x13   :  { %s1796_s7 = smov [#allocation2]   ;;  %s1721_s11 = scalar_lea.hbm %s2295_s0, 4096 }
  0x14   :  { %s18_s8 = sshll.u32 %s1796_s7, 4  ;;  %p1722_p8 = scmp.ne.s32.totalorder %s2295_s0, %s1721_s11  ;;  %s19_s8 = int_to_ptr.vmem [resolvable:$true] %s18_s8 }
  0x15   :  { %p1725_p9 = scmp.lt.u32.totalorder %s1721_s11, %s2295_s0 }
  0x17   :  { %p1727_p10 = pnand %p1725_p9, %p1722_p8 }
  0x19   :  { %1730 = shalt.err (!%p1727_p10)
}
  0x1a   :  { %s1731_s16 = scalar_lea.vmem %s19_s8, 4096  ;;  %p1736_p12 = scmp.lt.s32.totalorder %s19_s8, %s19_s8 }
  0x1b   :  { %p1732_p11 = scmp.ne.s32.totalorder %s19_s8, %s1731_s16  ;;  %p1737_p13 = scmp.lt.s32.totalorder %s1731_s16, %s1731_s16 }
  0x1d   :  { %p1738_p0 = por %p1737_p13, %p1736_p12 }
  0x1f   :  { %p1739_p1 = pnand %p1738_p0, %p1732_p11 }
  0x21   :  { %1742 = shalt.err (!%p1739_p1)
}
  0x22   :  { %s1797_s1 = smov 128   ;;  %s1798_s17 = smov 8  }
  0x23   :  { %24 = dma.hbm_to_vmem [thread:$0]  %s2295_s0, 4096, %s19_s8, [#allocation3], %s1797_s1, %s1797_s1, %s1798_s17  }
  0x24   :  { %s1799_s20 = smov [#allocation7]   ;;  %s1743_s24 = scalar_lea.hbm %s2298_s3, 2048 }
  0x25   :  { %s44_s21 = sshll.u32 %s1799_s20, 4  ;;  %p1744_p2 = scmp.ne.s32.totalorder %s2298_s3, %s1743_s24  ;;  %s45_s21 = int_to_ptr.vmem [resolvable:$true] %s44_s21 }
  0x26   :  { %p1747_p3 = scmp.lt.u32.totalorder %s1743_s24, %s2298_s3 }
  0x28   :  { %p1749_p4 = pnand %p1747_p3, %p1744_p2 }
  0x2a   :  { %1752 = shalt.err (!%p1749_p4)
}
  0x2b   :  { %s1753_s6 = scalar_lea.vmem %s45_s21, 2048  ;;  %p1758_p6 = scmp.lt.s32.totalorder %s45_s21, %s45_s21 }
  0x2c   :  { %p1754_p5 = scmp.ne.s32.totalorder %s45_s21, %s1753_s6  ;;  %p1759_p7 = scmp.lt.s32.totalorder %s1753_s6, %s1753_s6 }
  0x2e   :  { %p1760_p8 = por %p1759_p7, %p1758_p6 }
  0x30   :  { %p1761_p9 = pnand %p1760_p8, %p1754_p5 }
  0x32   :  { %1764 = shalt.err (!%p1761_p9)
}
  0x33   :  { %50 = dma.hbm_to_vmem [thread:$0]  %s2298_s3, 2048, %s45_s21, [#allocation6], %s1794_s28, %s1794_s28, %s1795_s29  }
  0x34   :  { %1787 = dma.done.wait [#allocation3], 4096  }
  0x35   :  { %1788 = vsyncadd [#allocation3], 4294963200 }
  0x36   :  { %1789 = dma.done.wait [#allocation6], 4096  }
  0x37   :  { %1790 = vsyncadd [#allocation6], 4294963200  ;;  %v1667_v0 = vld [vmem:[#allocation5] sm:$0xff]   ;;  %v1668_v1 = vld [vmem:[#allocation5 + $0x8] sm:$0xff]  }
  0x38   :  { %1467 = vmatprep.subr.bf16.mxu0 %v1667_v0  ;;  %v1669_v2 = vld [vmem:[#allocation5 + $0x10] sm:$0xff]   ;;  %v1670_v3 = vld [vmem:[#allocation5 + $0x18] sm:$0xff]   ;;  %v1876_v4 = vld [vmem:[#allocation2] sm:$0xff] }
  0x39   :  { %1468 = vmatpush3.bf16.msra.mxu0 %v1667_v0  ;;  %v1878_v5 = vld [vmem:[#allocation2 + $0x8] sm:$0xff]  ;;  %v95_v6 = vmax.f32 %v1876_v4, 0.0  ;;  %v1671_v9 = vld [vmem:[#allocation5 + $0x20] sm:$0xff]   ;;  %v1882_v11 = vld [vmem:[#allocation2 + $0x10] sm:$0xff] }
  0x3a   :  { %1469 = vmatprep.subr.bf16.mxu0 %v1668_v1  ;;  %v96_v7 = vmax.f32 %v1878_v5, 0.0  ;;  %v1672_v10 = vld [vmem:[#allocation5 + $0x28] sm:$0xff]   ;;  %v1884_v12 = vld [vmem:[#allocation2 + $0x18] sm:$0xff]  ;;  %v1886_v13 = vld [vmem:[#allocation2 + $0x20] sm:$0xff]  ;;  %v97_v17 = vmax.f32 %v1882_v11, 0.0 }
  0x3b   :  { %v1673_v14 = vld [vmem:[#allocation5 + $0x30] sm:$0xff]   ;;  %v1888_v15 = vld [vmem:[#allocation2 + $0x28] sm:$0xff]  ;;  %v1893_v18 = vld [vmem:[#allocation2 + $0x38] sm:$0xff]  ;;  %v98_v20 = vmax.f32 %v1884_v12, 0.0  ;;  %v99_v22 = vmax.f32 %v1886_v13, 0.0 }
  0x3c   :  { %v127_v8 = vpack.c.bf16 %v96_v7, %v95_v6  ;;  %v1890_v16 = vld [vmem:[#allocation2 + $0x30] sm:$0xff]  ;;  %v1675_v19 = vld [vmem:[#allocation7] sm:$0xff]   ;;  %v1676_v23 = vld [vmem:[#allocation7 + $0x8] sm:$0xff]   ;;  %v100_v25 = vmax.f32 %v1888_v15, 0.0  ;;  %v102_v29 = vmax.f32 %v1893_v18, 0.0 }
  0x3d   :  { %1470 = vmatpush3.bf16.msra.mxu0 %v1668_v1  ;;  %v1896_v21 = vld [vmem:[#allocation2 + $0x40] sm:$0xff]  ;;  %1515 = vmatprep.subr.bf16.mxu1 %v1675_v19  ;;  %v1674_v24 = vld [vmem:[#allocation5 + $0x38] sm:$0xff]   ;;  %v1900_v26 = vld [vmem:[#allocation2 + $0x48] sm:$0xff]  ;;  %v101_v27 = vmax.f32 %v1890_v16, 0.0  ;;  %v128_v34 = vpack.c.bf16 %v98_v20, %v97_v17 }
  0x3e   :  { %1471 = vmatprep.subr.bf16.mxu0 %v1669_v2  ;;  %1483 = vmatprep.mubr.bf16.mxu0 %v127_v8  ;;  %v1677_v28 = vld [vmem:[#allocation7 + $0x10] sm:$0xff]   ;;  %v103_v30 = vmax.f32 %v1896_v21, 0.0  ;;  %v104_v31 = vmax.f32 %v1900_v26, 0.0  ;;  %v1678_v32 = vld [vmem:[#allocation7 + $0x18] sm:$0xff]   ;;  %v1679_v33 = vld [vmem:[#allocation7 + $0x20] sm:$0xff]   ;;  %v129_v35 = vpack.c.bf16 %v100_v25, %v99_v22 }
  0x3f   :  { %1516 = vmatpush3.bf16.msra.mxu1 %v1675_v19  ;;  %v1680_v36 = vld [vmem:[#allocation7 + $0x28] sm:$0xff]   ;;  %v130_v37 = vpack.c.bf16 %v102_v29, %v101_v27  ;;  %v1906_v39 = vld [vmem:[#allocation2 + $0x50] sm:$0xff]  ;;  %v1908_v40 = vld [vmem:[#allocation2 + $0x58] sm:$0xff] }
  0x40   :  { %1517 = vmatprep.subr.bf16.mxu1 %v1676_v23  ;;  %v131_v38 = vpack.c.bf16 %v104_v31, %v103_v30  ;;  %v1910_v41 = vld [vmem:[#allocation2 + $0x60] sm:$0xff]  ;;  %v1912_v42 = vld [vmem:[#allocation2 + $0x68] sm:$0xff]  ;;  %v105_v43 = vmax.f32 %v1906_v39, 0.0  ;;  %v106_v44 = vmax.f32 %v1908_v40, 0.0  ;;  %v1918_v49 = vld [vmem:[#allocation2 + $0x70] sm:$0xff] }
  0x41   :  { %1472 = vmatpush3.bf16.msra.mxu0 %v1669_v2  ;;  %v107_v45 = vmax.f32 %v1910_v41, 0.0  ;;  %v108_v46 = vmax.f32 %v1912_v42, 0.0  ;;  %v1920_v50 = vld [vmem:[#allocation2 + $0x78] sm:$0xff]  ;;  %v1922_v51 = vld [vmem:[#allocation2 + $0x80] sm:$0xff]  ;;  %v1924_v52 = vld [vmem:[#allocation2 + $0x88] sm:$0xff]  ;;  %v109_v53 = vmax.f32 %v1918_v49, 0.0 }
  0x42   :  { %1473 = vmatprep.subr.bf16.mxu0 %v1670_v3  ;;  %v132_v47 = vpack.c.bf16 %v106_v44, %v105_v43  ;;  %v110_v54 = vmax.f32 %v1920_v50, 0.0  ;;  %v111_v55 = vmax.f32 %v1922_v51, 0.0  ;;  %v112_v56 = vmax.f32 %v1924_v52, 0.0  ;;  %v1930_v59 = vld [vmem:[#allocation2 + $0x90] sm:$0xff]  ;;  %v1932_v60 = vld [vmem:[#allocation2 + $0x98] sm:$0xff]  ;;  %v1934_v61 = vld [vmem:[#allocation2 + $0xa0] sm:$0xff] }
  0x43   :  { %1518 = vmatpush3.bf16.msra.mxu1 %v1676_v23  ;;  %v133_v48 = vpack.c.bf16 %v108_v46, %v107_v45  ;;  %v1936_v62 = vld [vmem:[#allocation2 + $0xa8] sm:$0xff]  ;;  %v113_v63 = vmax.f32 %v1930_v59, 0.0  ;;  %v114_v0 = vmax.f32 %v1932_v60, 0.0  ;;  %v115_v1 = vmax.f32 %v1934_v61, 0.0  ;;  %v1942_v7 = vld [vmem:[#allocation2 + $0xb0] sm:$0xff]  ;;  %v1944_v8 = vld [vmem:[#allocation2 + $0xb8] sm:$0xff] }
  0x44   :  { %1519 = vmatprep.subr.bf16.mxu1 %v1677_v28  ;;  %v134_v57 = vpack.c.bf16 %v110_v54, %v109_v53  ;;  %v135_v58 = vpack.c.bf16 %v112_v56, %v111_v55  ;;  %v116_v2 = vmax.f32 %v1936_v62, 0.0  ;;  %v118_v17 = vmax.f32 %v1944_v8, 0.0  ;;  %v1956_v25 = vld [vmem:[#allocation2 + $0xd8] sm:$0xff]  ;;  %v1958_v27 = vld [vmem:[#allocation2 + $0xe0] sm:$0xff]  ;;  %v1681_v44 = vld [vmem:[#allocation7 + $0x30] sm:$0xff]  }
  0x45   :  { %1474 = vmatpush3.bf16.msra.mxu0 %v1670_v3  ;;  %v136_v3 = vpack.c.bf16 %v114_v0, %v113_v63  ;;  %v122_v30 = vmax.f32 %v1956_v25, 0.0  ;;  %v123_v31 = vmax.f32 %v1958_v27, 0.0  ;;  %v1682_v45 = vld [vmem:[#allocation7 + $0x38] sm:$0xff]   ;;  %v1683_v46 = vld [vmem:[#allocation5 + $0x40] sm:$0xff]   ;;  %v1688_v55 = vld [vmem:[#allocation5 + $0x68] sm:$0xff]  }
  0x46   :  { %1475 = vmatprep.subr.bf16.mxu0 %v1671_v9  ;;  %v137_v6 = vpack.c.bf16 %v116_v2, %v115_v1  ;;  %v1686_v53 = vld [vmem:[#allocation5 + $0x58] sm:$0xff]   ;;  %v1687_v54 = vld [vmem:[#allocation5 + $0x60] sm:$0xff]   ;;  %v1689_v56 = vld [vmem:[#allocation5 + $0x70] sm:$0xff]  }
  0x47   :  { %1520 = vmatpush3.bf16.msra.mxu1 %v1677_v28  ;;  %v1960_v28 = vld [vmem:[#allocation2 + $0xe8] sm:$0xff] }
  0x48   :  { %1521 = vmatprep.subr.bf16.mxu1 %v1678_v32 }
  0x49   :  { %1476 = vmatpush3.bf16.msra.mxu0 %v1671_v9  ;;  %v1946_v9 = vld [vmem:[#allocation2 + $0xc0] sm:$0xff] }
  0x4a   :  { %1477 = vmatprep.subr.bf16.mxu0 %v1672_v10  ;;  %v119_v19 = vmax.f32 %v1946_v9, 0.0 }
  0x4b   :  { %1522 = vmatpush3.bf16.msra.mxu1 %v1678_v32  ;;  %v124_v32 = vmax.f32 %v1960_v28, 0.0 }
  0x4c   :  { %1523 = vmatprep.subr.bf16.mxu1 %v1679_v33 }
  0x4d   :  { %1478 = vmatpush3.bf16.msra.mxu0 %v1672_v10  ;;  %v1948_v10 = vld [vmem:[#allocation2 + $0xc8] sm:$0xff] }
  0x4e   :  { %1479 = vmatprep.subr.bf16.mxu0 %v1673_v14  ;;  %v120_v20 = vmax.f32 %v1948_v10, 0.0 }
  0x4f   :  { %1524 = vmatpush3.bf16.msra.mxu1 %v1679_v33 }
  0x50   :  { %1525 = vmatprep.subr.bf16.mxu1 %v1680_v36  ;;  %v139_v23 = vpack.c.bf16 %v120_v20, %v119_v19 }
  0x51   :  { %1480 = vmatpush3.bf16.msra.mxu0 %v1673_v14  ;;  %v117_v14 = vmax.f32 %v1942_v7, 0.0 }
  0x52   :  { %1481 = vmatprep.subr.bf16.mxu0 %v1674_v24 }
  0x53   :  { %1526 = vmatpush3.bf16.msra.mxu1 %v1680_v36  ;;  %v138_v22 = vpack.c.bf16 %v118_v17, %v117_v14  ;;  %v1968_v36 = vld [vmem:[#allocation2 + $0xf8] sm:$0xff] }
  0x54   :  { %1527 = vmatprep.subr.bf16.mxu1 %v1681_v44 }
  0x55   :  { %1482 = vmatpush3.bf16.msra.mxu0 %v1674_v24  ;;  %v1954_v24 = vld [vmem:[#allocation2 + $0xd0] sm:$0xff] }
  0x56   :  { %v121_v29 = vmax.f32 %v1954_v24, 0.0  ;;  %1563 = vmatprep.subr.bf16.mxu0 %v1683_v46 }
  0x57   :  { %1528 = vmatpush3.bf16.msra.mxu1 %v1681_v44 }
  0x58   :  { %1484 = vmatmul.mubr.bf16.vlgmr.msra.gmra.mrb[0].mxu0 %v128_v34  ;;  %v140_v33 = vpack.c.bf16 %v122_v30, %v121_v29  ;;  %v141_v34 = vpack.c.bf16 %v124_v32, %v123_v31  ;;  %1529 = vmatprep.subr.bf16.mxu1 %v1682_v45 }
  0x59   :  { %1487 = vmatprep.mubr.bf16.mxu0 %v129_v35  ;;  %v1966_v35 = vld [vmem:[#allocation2 + $0xf0] sm:$0xff]  ;;  %1564 = vmatpush3.bf16.msra.mxu0 %v1683_v46 }
  0x5b   :  { %1530 = vmatpush3.bf16.msra.mxu1 %v1682_v45 }
  0x60   :  { %1488 = vmatmul.mubr.bf16.gmra.mrb[4].mxu0 %v130_v37  ;;  %v125_v37 = vmax.f32 %v1966_v35, 0.0 }
  0x61   :  { %1491 = vmatprep.mubr.bf16.mxu0 %v131_v38  ;;  %v126_v38 = vmax.f32 %v1968_v36, 0.0 }
  0x63   :  { %v142_v43 = vpack.c.bf16 %v126_v38, %v125_v37 }
  0x68   :  { %1492 = vmatmul.mubr.bf16.gmra.mrb[8].mxu0 %v132_v47  ;;  %v1684_v47 = vld [vmem:[#allocation5 + $0x48] sm:$0xff]  }
  0x69   :  { %1495 = vmatprep.mubr.bf16.mxu0 %v133_v48  ;;  %1565 = vmatprep.subr.bf16.mxu0 %v1684_v47  ;;  %v1685_v48 = vld [vmem:[#allocation5 + $0x50] sm:$0xff]  }
  0x6a   :  { %1566 = vmatpush3.bf16.msra.mxu0 %v1684_v47 }
  0x6b   :  { %1567 = vmatprep.subr.bf16.mxu0 %v1685_v48 }
  0x6e   :  { %1568 = vmatpush3.bf16.msra.mxu0 %v1685_v48 }
  0x6f   :  { %1569 = vmatprep.subr.bf16.mxu0 %v1686_v53 }
  0x70   :  { %1496 = vmatmul.mubr.bf16.gmra.mrb[12].mxu0 %v134_v57  ;;  %v1975_v57 = vld [vmem:[%s2297_s2] ss:$0 sm:$0xff] }
  0x71   :  { %1499 = vmatprep.mubr.bf16.mxu0 %v135_v58 }
  0x72   :  { %1570 = vmatpush3.bf16.msra.mxu0 %v1686_v53 }
  0x73   :  { %1571 = vmatprep.subr.bf16.mxu0 %v1687_v54 }
  0x76   :  { %1572 = vmatpush3.bf16.msra.mxu0 %v1687_v54 }
  0x77   :  { %1573 = vmatprep.subr.bf16.mxu0 %v1688_v55 }
  0x78   :  { %1500 = vmatmul.mubr.bf16.gmra.mrb[16].mxu0 %v136_v3 }
  0x79   :  { %1503 = vmatprep.mubr.bf16.mxu0 %v137_v6 }
  0x7a   :  { %1574 = vmatpush3.bf16.msra.mxu0 %v1688_v55 }
  0x7b   :  { %1575 = vmatprep.subr.bf16.mxu0 %v1689_v56 }
  0x7e   :  { %1576 = vmatpush3.bf16.msra.mxu0 %v1689_v56 }
  0x80   :  { %1504 = vmatmul.mubr.bf16.gmra.mrb[20].mxu0 %v138_v22 }
  0x81   :  { %1507 = vmatprep.mubr.bf16.mxu0 %v139_v23 }
  0x88   :  { %1508 = vmatmul.mubr.bf16.gmra.mrb[24].mxu0 %v140_v33 }
  0x89   :  { %1511 = vmatprep.mubr.bf16.mxu0 %v141_v34 }
  0x90   :  { %1512 = vmatmul.mubr.bf16.gmra.mrb[28].mxu0 %v142_v43 }
 0x12b   :  { %v1485_v58 = vpop.f32.mrb[0].mxu0 }
 0x12c   :  { %v257_v63 = vadd.f32 %v1485_v58, %v1975_v57  ;;  %v248_v0 = vpop.f32.mrb[1].mxu0 }
 0x12d   :  { %v249_v1 = vadd.f32 %v1975_v57, %v248_v0  ;;  %v1486_v2 = vpop.f32.mrb[2].mxu0 }
 0x12e   :  { %v260_v3 = vadd.f32 %v1486_v2, %v1975_v57  ;;  %v251_v6 = vpop.f32.mrb[3].mxu0  ;;  %v377_v17 = vmax.f32 %v257_v63, 0.0 }
 0x12f   :  { %v252_v14 = vadd.f32 %v1975_v57, %v251_v6  ;;  %v375_v20 = vmax.f32 %v249_v1, 0.0 }
 0x130   :  { %v378_v19 = vmax.f32 %v260_v3, 0.0 }
 0x131   :  { %v376_v22 = vmax.f32 %v252_v14, 0.0 }
 0x132   :  { %v408_v23 = vpack.c.bf16 %v378_v19, %v377_v17 }
 0x133   :  { %v1489_v29 = vpop.f32.mrb[4].mxu0  ;;  %v407_v30 = vpack.c.bf16 %v376_v22, %v375_v20 }
 0x134   :  { %v273_v31 = vadd.f32 %v1489_v29, %v1975_v57  ;;  %v264_v32 = vpop.f32.mrb[5].mxu0 }
 0x135   :  { %v265_v33 = vadd.f32 %v1975_v57, %v264_v32  ;;  %v1490_v34 = vpop.f32.mrb[6].mxu0  ;;  %1531 = vmatprep.mubr.bf16.mxu1 %v407_v30 }
 0x136   :  { %v276_v37 = vadd.f32 %v1490_v34, %v1975_v57  ;;  %v267_v38 = vpop.f32.mrb[7].mxu0  ;;  %1532 = vmatmul.mubr.bf16.vlgmr.msra.gmra.mrb[0].mxu1 %v408_v23  ;;  %v381_v44 = vmax.f32 %v273_v31, 0.0 }
 0x137   :  { %v268_v43 = vadd.f32 %v1975_v57, %v267_v38  ;;  %v379_v46 = vmax.f32 %v265_v33, 0.0 }
 0x138   :  { %v382_v45 = vmax.f32 %v276_v37, 0.0 }
 0x139   :  { %v380_v47 = vmax.f32 %v268_v43, 0.0 }
 0x13a   :  { %v410_v48 = vpack.c.bf16 %v382_v45, %v381_v44 }
 0x13b   :  { %v409_v53 = vpack.c.bf16 %v380_v47, %v379_v46  ;;  %v1493_v54 = vpop.f32.mrb[8].mxu0 }
 0x13c   :  { %v289_v55 = vadd.f32 %v1493_v54, %v1975_v57  ;;  %v280_v56 = vpop.f32.mrb[9].mxu0 }
 0x13d   :  { %v281_v58 = vadd.f32 %v1975_v57, %v280_v56  ;;  %v1494_v63 = vpop.f32.mrb[10].mxu0  ;;  %1535 = vmatprep.mubr.bf16.mxu1 %v409_v53 }
 0x13e   :  { %v292_v0 = vadd.f32 %v1494_v63, %v1975_v57  ;;  %v283_v1 = vpop.f32.mrb[11].mxu0  ;;  %1536 = vmatmul.mubr.bf16.gmra.mrb[4].mxu1 %v410_v48  ;;  %v385_v3 = vmax.f32 %v289_v55, 0.0 }
 0x13f   :  { %v284_v2 = vadd.f32 %v1975_v57, %v283_v1  ;;  %v383_v14 = vmax.f32 %v281_v58, 0.0 }
 0x140   :  { %v386_v6 = vmax.f32 %v292_v0, 0.0 }
 0x141   :  { %v384_v17 = vmax.f32 %v284_v2, 0.0 }
 0x142   :  { %v412_v19 = vpack.c.bf16 %v386_v6, %v385_v3 }
 0x143   :  { %v411_v20 = vpack.c.bf16 %v384_v17, %v383_v14  ;;  %v1497_v22 = vpop.f32.mrb[12].mxu0 }
 0x144   :  { %v305_v23 = vadd.f32 %v1497_v22, %v1975_v57  ;;  %v296_v29 = vpop.f32.mrb[13].mxu0 }
 0x145   :  { %v297_v30 = vadd.f32 %v1975_v57, %v296_v29  ;;  %v1498_v31 = vpop.f32.mrb[14].mxu0  ;;  %1539 = vmatprep.mubr.bf16.mxu1 %v411_v20 }
 0x146   :  { %v308_v32 = vadd.f32 %v1498_v31, %v1975_v57  ;;  %v299_v33 = vpop.f32.mrb[15].mxu0  ;;  %1540 = vmatmul.mubr.bf16.gmra.mrb[8].mxu1 %v412_v19  ;;  %v389_v37 = vmax.f32 %v305_v23, 0.0 }
 0x147   :  { %v300_v34 = vadd.f32 %v1975_v57, %v299_v33  ;;  %v387_v43 = vmax.f32 %v297_v30, 0.0 }
 0x148   :  { %v390_v38 = vmax.f32 %v308_v32, 0.0 }
 0x149   :  { %v388_v44 = vmax.f32 %v300_v34, 0.0 }
 0x14a   :  { %v414_v45 = vpack.c.bf16 %v390_v38, %v389_v37 }
 0x14b   :  { %v413_v46 = vpack.c.bf16 %v388_v44, %v387_v43  ;;  %v1501_v47 = vpop.f32.mrb[16].mxu0 }
 0x14c   :  { %v321_v48 = vadd.f32 %v1501_v47, %v1975_v57  ;;  %v312_v53 = vpop.f32.mrb[17].mxu0 }
 0x14d   :  { %v313_v54 = vadd.f32 %v1975_v57, %v312_v53  ;;  %v1502_v55 = vpop.f32.mrb[18].mxu0  ;;  %1543 = vmatprep.mubr.bf16.mxu1 %v413_v46 }
 0x14e   :  { %v324_v56 = vadd.f32 %v1502_v55, %v1975_v57  ;;  %v315_v58 = vpop.f32.mrb[19].mxu0  ;;  %1544 = vmatmul.mubr.bf16.gmra.mrb[12].mxu1 %v414_v45  ;;  %v393_v0 = vmax.f32 %v321_v48, 0.0 }
 0x14f   :  { %v316_v63 = vadd.f32 %v1975_v57, %v315_v58  ;;  %v391_v2 = vmax.f32 %v313_v54, 0.0 }
 0x150   :  { %v394_v1 = vmax.f32 %v324_v56, 0.0 }
 0x151   :  { %v392_v3 = vmax.f32 %v316_v63, 0.0 }
 0x152   :  { %v416_v6 = vpack.c.bf16 %v394_v1, %v393_v0 }
 0x153   :  { %v415_v14 = vpack.c.bf16 %v392_v3, %v391_v2  ;;  %v1505_v17 = vpop.f32.mrb[20].mxu0 }
 0x154   :  { %v337_v19 = vadd.f32 %v1505_v17, %v1975_v57  ;;  %v328_v20 = vpop.f32.mrb[21].mxu0 }
 0x155   :  { %v329_v22 = vadd.f32 %v1975_v57, %v328_v20  ;;  %v1506_v23 = vpop.f32.mrb[22].mxu0  ;;  %1547 = vmatprep.mubr.bf16.mxu1 %v415_v14 }
 0x156   :  { %v340_v29 = vadd.f32 %v1506_v23, %v1975_v57  ;;  %v331_v30 = vpop.f32.mrb[23].mxu0  ;;  %1548 = vmatmul.mubr.bf16.gmra.mrb[16].mxu1 %v416_v6  ;;  %v397_v32 = vmax.f32 %v337_v19, 0.0 }
 0x157   :  { %v332_v31 = vadd.f32 %v1975_v57, %v331_v30  ;;  %v395_v34 = vmax.f32 %v329_v22, 0.0 }
 0x158   :  { %v398_v33 = vmax.f32 %v340_v29, 0.0 }
 0x159   :  { %v396_v37 = vmax.f32 %v332_v31, 0.0 }
 0x15a   :  { %v418_v38 = vpack.c.bf16 %v398_v33, %v397_v32 }
 0x15b   :  { %v417_v43 = vpack.c.bf16 %v396_v37, %v395_v34  ;;  %v1509_v44 = vpop.f32.mrb[24].mxu0  ;;  %v1690_v37 = vld [vmem:[#allocation5 + $0x78] sm:$0xff]  }
 0x15c   :  { %v353_v45 = vadd.f32 %v1509_v44, %v1975_v57  ;;  %v344_v46 = vpop.f32.mrb[25].mxu0  ;;  %1577 = vmatprep.subr.bf16.mxu0 %v1690_v37  ;;  %v1693_v44 = vld [vmem:[#allocation7 + $0x50] sm:$0xff]  }
 0x15d   :  { %v345_v47 = vadd.f32 %v1975_v57, %v344_v46  ;;  %v1510_v48 = vpop.f32.mrb[26].mxu0  ;;  %1551 = vmatprep.mubr.bf16.mxu1 %v417_v43  ;;  %1578 = vmatpush3.bf16.msra.mxu0 %v1690_v37  ;;  %v1692_v43 = vld [vmem:[#allocation7 + $0x48] sm:$0xff]  }
 0x15e   :  { %v356_v53 = vadd.f32 %v1510_v48, %v1975_v57  ;;  %v347_v54 = vpop.f32.mrb[27].mxu0  ;;  %1552 = vmatmul.mubr.bf16.gmra.mrb[20].mxu1 %v418_v38  ;;  %v401_v56 = vmax.f32 %v353_v45, 0.0  ;;  %v1691_v38 = vld [vmem:[#allocation7 + $0x40] sm:$0xff]   ;;  %v1696_v46 = vld [vmem:[#allocation7 + $0x68] sm:$0xff]  }
 0x15f   :  { %v348_v55 = vadd.f32 %v1975_v57, %v347_v54  ;;  %v399_v63 = vmax.f32 %v345_v47, 0.0  ;;  %1611 = vmatprep.subr.bf16.mxu1 %v1691_v38  ;;  %v1695_v45 = vld [vmem:[#allocation7 + $0x60] sm:$0xff]   ;;  %v1697_v47 = vld [vmem:[#allocation7 + $0x70] sm:$0xff]  }
 0x160   :  { %v402_v58 = vmax.f32 %v356_v53, 0.0  ;;  %1612 = vmatpush3.bf16.msra.mxu1 %v1691_v38  ;;  %v2012_v48 = vld [vmem:[%s2299_s4] ss:$0 sm:$0xff] }
 0x161   :  { %v400_v0 = vmax.f32 %v348_v55, 0.0  ;;  %1613 = vmatprep.subr.bf16.mxu1 %v1692_v43 }
 0x162   :  { %v420_v1 = vpack.c.bf16 %v402_v58, %v401_v56 }
 0x163   :  { %v419_v2 = vpack.c.bf16 %v400_v0, %v399_v63  ;;  %v1513_v3 = vpop.f32.mrb[28].mxu0 }
 0x164   :  { %v369_v6 = vadd.f32 %v1513_v3, %v1975_v57  ;;  %v360_v14 = vpop.f32.mrb[29].mxu0  ;;  %1614 = vmatpush3.bf16.msra.mxu1 %v1692_v43 }
 0x165   :  { %v361_v17 = vadd.f32 %v1975_v57, %v360_v14  ;;  %v1514_v19 = vpop.f32.mrb[30].mxu0  ;;  %1555 = vmatprep.mubr.bf16.mxu1 %v419_v2  ;;  %1615 = vmatprep.subr.bf16.mxu1 %v1693_v44 }
 0x166   :  { %v372_v20 = vadd.f32 %v1514_v19, %v1975_v57  ;;  %v363_v22 = vpop.f32.mrb[31].mxu0  ;;  %1556 = vmatmul.mubr.bf16.gmra.mrb[24].mxu1 %v420_v1  ;;  %v405_v29 = vmax.f32 %v369_v6, 0.0 }
 0x167   :  { %v364_v23 = vadd.f32 %v1975_v57, %v363_v22  ;;  %v403_v31 = vmax.f32 %v361_v17, 0.0  ;;  %v1694_v57 = vld [vmem:[#allocation7 + $0x58] sm:$0xff]  }
 0x168   :  { %v406_v30 = vmax.f32 %v372_v20, 0.0  ;;  %1616 = vmatpush3.bf16.msra.mxu1 %v1693_v44 }
 0x169   :  { %v404_v32 = vmax.f32 %v364_v23, 0.0  ;;  %1617 = vmatprep.subr.bf16.mxu1 %v1694_v57 }
 0x16a   :  { %v422_v33 = vpack.c.bf16 %v406_v30, %v405_v29 }
 0x16b   :  { %v421_v34 = vpack.c.bf16 %v404_v32, %v403_v31 }
 0x16c   :  { %1618 = vmatpush3.bf16.msra.mxu1 %v1694_v57 }
 0x16d   :  { %1559 = vmatprep.mubr.bf16.mxu1 %v421_v34  ;;  %1619 = vmatprep.subr.bf16.mxu1 %v1695_v45 }
 0x16e   :  { %1560 = vmatmul.mubr.bf16.gmra.mrb[28].mxu1 %v422_v33 }
 0x170   :  { %1620 = vmatpush3.bf16.msra.mxu1 %v1695_v45 }
 0x171   :  { %1621 = vmatprep.subr.bf16.mxu1 %v1696_v46 }
 0x174   :  { %1622 = vmatpush3.bf16.msra.mxu1 %v1696_v46 }
 0x175   :  { %1623 = vmatprep.subr.bf16.mxu1 %v1697_v47 }
 0x178   :  { %1624 = vmatpush3.bf16.msra.mxu1 %v1697_v47 }
 0x209   :  { %v1533_v53 = vpop.f32.mrb[0].mxu1 }
 0x20a   :  { %v537_v54 = vadd.f32 %v1533_v53, %v2012_v48  ;;  %v528_v55 = vpop.f32.mrb[1].mxu1 }
 0x20b   :  { %v529_v56 = vadd.f32 %v2012_v48, %v528_v55  ;;  %v1534_v58 = vpop.f32.mrb[2].mxu1 }
 0x20c   :  { %v540_v63 = vadd.f32 %v1534_v58, %v2012_v48  ;;  %v531_v0 = vpop.f32.mrb[3].mxu1  ;;  %v2022_v3 = vadd.f32 %v537_v54, %v1882_v11 }
 0x20d   :  { %v2018_v1 = vadd.f32 %v529_v56, %v1876_v4  ;;  %v532_v2 = vadd.f32 %v2012_v48, %v531_v0 }
 0x20e   :  { %v2025_v6 = vadd.f32 %v540_v63, %v1884_v12  ;;  %v689_v4 = vmax.f32 %v2022_v3, 0.0 }
 0x20f   :  { %v2028_v14 = vadd.f32 %v532_v2, %v1878_v5  ;;  %v687_v19 = vmax.f32 %v2018_v1, 0.0 }
 0x210   :  { %v690_v17 = vmax.f32 %v2025_v6, 0.0 }
 0x211   :  { %v688_v20 = vmax.f32 %v2028_v14, 0.0  ;;  %v1537_v22 = vpop.f32.mrb[4].mxu1 }
 0x212   :  { %v553_v23 = vadd.f32 %v1537_v22, %v2012_v48  ;;  %v544_v29 = vpop.f32.mrb[5].mxu1  ;;  %v720_v31 = vpack.c.bf16 %v690_v17, %v689_v4 }
 0x213   :  { %v545_v11 = vadd.f32 %v2012_v48, %v544_v29  ;;  %v1538_v30 = vpop.f32.mrb[6].mxu1  ;;  %v719_v12 = vpack.c.bf16 %v688_v20, %v687_v19 }
 0x214   :  { %v556_v5 = vadd.f32 %v1538_v30, %v2012_v48  ;;  %v547_v32 = vpop.f32.mrb[7].mxu1  ;;  %v2042_v37 = vadd.f32 %v553_v23, %v1890_v16 }
 0x215   :  { %v2038_v33 = vadd.f32 %v545_v11, %v1886_v13  ;;  %v548_v34 = vadd.f32 %v2012_v48, %v547_v32  ;;  %1579 = vmatprep.mubr.bf16.mxu0 %v719_v12 }
 0x216   :  { %v2045_v38 = vadd.f32 %v556_v5, %v1893_v18  ;;  %1580 = vmatmul.mubr.bf16.vlgmr.msra.gmra.mrb[32].mxu0 %v720_v31  ;;  %v693_v46 = vmax.f32 %v2042_v37, 0.0 }
 0x217   :  { %v2048_v43 = vadd.f32 %v548_v34, %v1888_v15  ;;  %v691_v57 = vmax.f32 %v2038_v33, 0.0 }
 0x218   :  { %v694_v44 = vmax.f32 %v2045_v38, 0.0 }
 0x219   :  { %v692_v13 = vmax.f32 %v2048_v43, 0.0  ;;  %v1541_v45 = vpop.f32.mrb[8].mxu1 }
 0x21a   :  { %v569_v47 = vadd.f32 %v1541_v45, %v2012_v48  ;;  %v560_v16 = vpop.f32.mrb[9].mxu1  ;;  %v722_v56 = vpack.c.bf16 %v694_v44, %v693_v46 }
 0x21b   :  { %v561_v53 = vadd.f32 %v2012_v48, %v560_v16  ;;  %v1542_v18 = vpop.f32.mrb[10].mxu1  ;;  %v721_v54 = vpack.c.bf16 %v692_v13, %v691_v57 }
 0x21c   :  { %v572_v55 = vadd.f32 %v1542_v18, %v2012_v48  ;;  %v563_v15 = vpop.f32.mrb[11].mxu1  ;;  %v2062_v0 = vadd.f32 %v569_v47, %v1906_v39 }
 0x21d   :  { %v2058_v58 = vadd.f32 %v561_v53, %v1896_v21  ;;  %v564_v63 = vadd.f32 %v2012_v48, %v563_v15  ;;  %1583 = vmatprep.mubr.bf16.mxu0 %v721_v54 }
 0x21e   :  { %v2065_v2 = vadd.f32 %v572_v55, %v1908_v40  ;;  %1584 = vmatmul.mubr.bf16.gmra.mrb[36].mxu0 %v722_v56  ;;  %v697_v4 = vmax.f32 %v2062_v0, 0.0 }
 0x21f   :  { %v2068_v17 = vadd.f32 %v564_v63, %v1900_v26  ;;  %v695_v20 = vmax.f32 %v2058_v58, 0.0 }
 0x220   :  { %v698_v19 = vmax.f32 %v2065_v2, 0.0 }
 0x221   :  { %v696_v21 = vmax.f32 %v2068_v17, 0.0  ;;  %v1545_v22 = vpop.f32.mrb[12].mxu1 }
 0x222   :  { %v585_v23 = vadd.f32 %v1545_v22, %v2012_v48  ;;  %v576_v39 = vpop.f32.mrb[13].mxu1  ;;  %v724_v12 = vpack.c.bf16 %v698_v19, %v697_v4 }
 0x223   :  { %v577_v29 = vadd.f32 %v2012_v48, %v576_v39  ;;  %v1546_v40 = vpop.f32.mrb[14].mxu1  ;;  %v723_v11 = vpack.c.bf16 %v696_v21, %v695_v20 }
 0x224   :  { %v588_v30 = vadd.f32 %v1546_v40, %v2012_v48  ;;  %v579_v26 = vpop.f32.mrb[15].mxu1  ;;  %v2082_v32 = vadd.f32 %v585_v23, %v1918_v49 }
 0x225   :  { %v2078_v31 = vadd.f32 %v577_v29, %v1910_v41  ;;  %v580_v5 = vadd.f32 %v2012_v48, %v579_v26  ;;  %1587 = vmatprep.mubr.bf16.mxu0 %v723_v11 }
 0x226   :  { %v2085_v34 = vadd.f32 %v588_v30, %v1920_v50  ;;  %1588 = vmatmul.mubr.bf16.gmra.mrb[40].mxu0 %v724_v12  ;;  %v701_v46 = vmax.f32 %v2082_v32, 0.0 }
 0x227   :  { %v2088_v44 = vadd.f32 %v580_v5, %v1912_v42  ;;  %v699_v13 = vmax.f32 %v2078_v31, 0.0 }
 0x228   :  { %v702_v57 = vmax.f32 %v2085_v34, 0.0 }
 0x229   :  { %v700_v41 = vmax.f32 %v2088_v44, 0.0  ;;  %v1549_v45 = vpop.f32.mrb[16].mxu1 }
 0x22a   :  { %v601_v47 = vadd.f32 %v1549_v45, %v2012_v48  ;;  %v592_v49 = vpop.f32.mrb[17].mxu1  ;;  %v726_v54 = vpack.c.bf16 %v702_v57, %v701_v46 }
 0x22b   :  { %v593_v16 = vadd.f32 %v2012_v48, %v592_v49  ;;  %v1550_v50 = vpop.f32.mrb[18].mxu1  ;;  %v725_v53 = vpack.c.bf16 %v700_v41, %v699_v13 }
 0x22c   :  { %v604_v18 = vadd.f32 %v1550_v50, %v2012_v48  ;;  %v595_v42 = vpop.f32.mrb[19].mxu1  ;;  %v2102_v56 = vadd.f32 %v601_v47, %v1930_v59 }
 0x22d   :  { %v2098_v55 = vadd.f32 %v593_v16, %v1922_v51  ;;  %v596_v15 = vadd.f32 %v2012_v48, %v595_v42  ;;  %1591 = vmatprep.mubr.bf16.mxu0 %v725_v53 }
 0x22e   :  { %v2105_v63 = vadd.f32 %v604_v18, %v1932_v60  ;;  %1592 = vmatmul.mubr.bf16.gmra.mrb[44].mxu0 %v726_v54  ;;  %v705_v4 = vmax.f32 %v2102_v56, 0.0 }
 0x22f   :  { %v2108_v19 = vadd.f32 %v596_v15, %v1924_v52  ;;  %v703_v21 = vmax.f32 %v2098_v55, 0.0 }
 0x230   :  { %v706_v20 = vmax.f32 %v2105_v63, 0.0 }
 0x231   :  { %v704_v51 = vmax.f32 %v2108_v19, 0.0  ;;  %v1553_v22 = vpop.f32.mrb[20].mxu1 }
 0x232   :  { %v617_v23 = vadd.f32 %v1553_v22, %v2012_v48  ;;  %v608_v59 = vpop.f32.mrb[21].mxu1  ;;  %v728_v11 = vpack.c.bf16 %v706_v20, %v705_v4 }
 0x233   :  { %v609_v39 = vadd.f32 %v2012_v48, %v608_v59  ;;  %v1554_v60 = vpop.f32.mrb[22].mxu1  ;;  %v727_v29 = vpack.c.bf16 %v704_v51, %v703_v21 }
 0x234   :  { %v620_v40 = vadd.f32 %v1554_v60, %v2012_v48  ;;  %v611_v52 = vpop.f32.mrb[23].mxu1  ;;  %v2122_v12 = vadd.f32 %v617_v23, %v1942_v7 }
 0x235   :  { %v2118_v30 = vadd.f32 %v609_v39, %v1934_v61  ;;  %v612_v26 = vadd.f32 %v2012_v48, %v611_v52  ;;  %1595 = vmatprep.mubr.bf16.mxu0 %v727_v29 }
 0x236   :  { %v2125_v5 = vadd.f32 %v620_v40, %v1944_v8  ;;  %1596 = vmatmul.mubr.bf16.gmra.mrb[48].mxu0 %v728_v11  ;;  %v709_v46 = vmax.f32 %v2122_v12, 0.0 }
 0x237   :  { %v2128_v57 = vadd.f32 %v612_v26, %v1936_v62  ;;  %v707_v41 = vmax.f32 %v2118_v30, 0.0 }
 0x238   :  { %v710_v13 = vmax.f32 %v2125_v5, 0.0 }
 0x239   :  { %v708_v61 = vmax.f32 %v2128_v57, 0.0  ;;  %v1557_v45 = vpop.f32.mrb[24].mxu1 }
 0x23a   :  { %v633_v47 = vadd.f32 %v1557_v45, %v2012_v48  ;;  %v624_v7 = vpop.f32.mrb[25].mxu1  ;;  %v730_v53 = vpack.c.bf16 %v710_v13, %v709_v46 }
 0x23b   :  { %v625_v49 = vadd.f32 %v2012_v48, %v624_v7  ;;  %v1558_v8 = vpop.f32.mrb[26].mxu1  ;;  %v729_v16 = vpack.c.bf16 %v708_v61, %v707_v41 }
 0x23c   :  { %v636_v50 = vadd.f32 %v1558_v8, %v2012_v48  ;;  %v627_v62 = vpop.f32.mrb[27].mxu1  ;;  %v2142_v54 = vadd.f32 %v633_v47, %v1954_v24 }
 0x23d   :  { %v2138_v18 = vadd.f32 %v625_v49, %v1946_v9  ;;  %v628_v42 = vadd.f32 %v2012_v48, %v627_v62  ;;  %1599 = vmatprep.mubr.bf16.mxu0 %v729_v16 }
 0x23e   :  { %v2145_v15 = vadd.f32 %v636_v50, %v1956_v25  ;;  %1600 = vmatmul.mubr.bf16.gmra.mrb[52].mxu0 %v730_v53  ;;  %v713_v4 = vmax.f32 %v2142_v54, 0.0 }
 0x23f   :  { %v2148_v20 = vadd.f32 %v628_v42, %v1948_v10  ;;  %v711_v51 = vmax.f32 %v2138_v18, 0.0 }
 0x240   :  { %v714_v21 = vmax.f32 %v2145_v15, 0.0 }
 0x241   :  { %v712_v9 = vmax.f32 %v2148_v20, 0.0  ;;  %v1561_v22 = vpop.f32.mrb[28].mxu1 }
 0x242   :  { %v649_v23 = vadd.f32 %v1561_v22, %v2012_v48  ;;  %v640_v24 = vpop.f32.mrb[29].mxu1  ;;  %v732_v29 = vpack.c.bf16 %v714_v21, %v713_v4 }
 0x243   :  { %v641_v59 = vadd.f32 %v2012_v48, %v640_v24  ;;  %v1562_v25 = vpop.f32.mrb[30].mxu1  ;;  %v731_v39 = vpack.c.bf16 %v712_v9, %v711_v51 }
 0x244   :  { %v652_v60 = vadd.f32 %v1562_v25, %v2012_v48  ;;  %v643_v10 = vpop.f32.mrb[31].mxu1  ;;  %v2162_v11 = vadd.f32 %v649_v23, %v1966_v35  ;;  %v1698_v35 = vld [vmem:[#allocation7 + $0x78] sm:$0xff]  }
 0x245   :  { %v2158_v40 = vadd.f32 %v641_v59, %v1958_v27  ;;  %v644_v52 = vadd.f32 %v2012_v48, %v643_v10  ;;  %1603 = vmatprep.mubr.bf16.mxu0 %v731_v39  ;;  %1625 = vmatprep.subr.bf16.mxu1 %v1698_v35 }
 0x246   :  { %v2165_v26 = vadd.f32 %v652_v60, %v1968_v36  ;;  %1604 = vmatmul.mubr.bf16.gmra.mrb[56].mxu0 %v732_v29  ;;  %v717_v45 = vmax.f32 %v2162_v11, 0.0  ;;  %1626 = vmatpush3.bf16.msra.mxu1 %v1698_v35 }
 0x247   :  { %v2168_v13 = vadd.f32 %v644_v52, %v1960_v28  ;;  %v715_v61 = vmax.f32 %v2158_v40, 0.0  ;;  %v2177_v28 = vld [vmem:[%s2297_s2 + $0x1] ss:$0 sm:$0xff] }
 0x248   :  { %v718_v41 = vmax.f32 %v2165_v26, 0.0 }
 0x249   :  { %v716_v27 = vmax.f32 %v2168_v13, 0.0 }
 0x24a   :  { %v734_v46 = vpack.c.bf16 %v718_v41, %v717_v45 }
 0x24b   :  { %v733_v48 = vpack.c.bf16 %v716_v27, %v715_v61 }
 0x24d   :  { %1607 = vmatprep.mubr.bf16.mxu0 %v733_v48 }
 0x24e   :  { %1608 = vmatmul.mubr.bf16.gmra.mrb[60].mxu0 %v734_v46 }
 0x2e9   :  { %v1581_v36 = vpop.f32.mrb[32].mxu0 }
 0x2ea   :  { %v851_v47 = vadd.f32 %v1581_v36, %v2177_v28  ;;  %v842_v7 = vpop.f32.mrb[33].mxu0 }
 0x2eb   :  { %v843_v49 = vadd.f32 %v2177_v28, %v842_v7  ;;  %v1582_v8 = vpop.f32.mrb[34].mxu0 }
 0x2ec   :  { %v854_v16 = vadd.f32 %v1582_v8, %v2177_v28  ;;  %v845_v50 = vpop.f32.mrb[35].mxu0  ;;  %v971_v53 = vmax.f32 %v851_v47, 0.0 }
 0x2ed   :  { %v846_v62 = vadd.f32 %v2177_v28, %v845_v50  ;;  %v969_v21 = vmax.f32 %v843_v49, 0.0 }
 0x2ee   :  { %v972_v42 = vmax.f32 %v854_v16, 0.0 }
 0x2ef   :  { %v970_v51 = vmax.f32 %v846_v62, 0.0 }
 0x2f0   :  { %v1002_v9 = vpack.c.bf16 %v972_v42, %v971_v53 }
 0x2f1   :  { %v1001_v22 = vpack.c.bf16 %v970_v51, %v969_v21  ;;  %v1585_v4 = vpop.f32.mrb[36].mxu0 }
 0x2f2   :  { %v867_v23 = vadd.f32 %v1585_v4, %v2177_v28  ;;  %v858_v24 = vpop.f32.mrb[37].mxu0 }
 0x2f3   :  { %v859_v59 = vadd.f32 %v2177_v28, %v858_v24  ;;  %v1586_v25 = vpop.f32.mrb[38].mxu0  ;;  %1627 = vmatprep.mubr.bf16.mxu1 %v1001_v22 }
 0x2f4   :  { %v870_v39 = vadd.f32 %v1586_v25, %v2177_v28  ;;  %v861_v60 = vpop.f32.mrb[39].mxu0  ;;  %1628 = vmatmul.mubr.bf16.vlgmr.msra.gmra.mrb[32].mxu1 %v1002_v9  ;;  %v975_v29 = vmax.f32 %v867_v23, 0.0 }
 0x2f5   :  { %v862_v10 = vadd.f32 %v2177_v28, %v861_v60  ;;  %v973_v41 = vmax.f32 %v859_v59, 0.0 }
 0x2f6   :  { %v976_v52 = vmax.f32 %v870_v39, 0.0 }
 0x2f7   :  { %v974_v61 = vmax.f32 %v862_v10, 0.0 }
 0x2f8   :  { %v1004_v27 = vpack.c.bf16 %v976_v52, %v975_v29 }
 0x2f9   :  { %v1003_v45 = vpack.c.bf16 %v974_v61, %v973_v41  ;;  %v1589_v48 = vpop.f32.mrb[40].mxu0 }
 0x2fa   :  { %v883_v46 = vadd.f32 %v1589_v48, %v2177_v28  ;;  %v874_v35 = vpop.f32.mrb[41].mxu0 }
 0x2fb   :  { %v875_v36 = vadd.f32 %v2177_v28, %v874_v35  ;;  %v1590_v47 = vpop.f32.mrb[42].mxu0  ;;  %1631 = vmatprep.mubr.bf16.mxu1 %v1003_v45 }
 0x2fc   :  { %v886_v7 = vadd.f32 %v1590_v47, %v2177_v28  ;;  %v877_v49 = vpop.f32.mrb[43].mxu0  ;;  %1632 = vmatmul.mubr.bf16.gmra.mrb[36].mxu1 %v1004_v27  ;;  %v979_v16 = vmax.f32 %v883_v46, 0.0 }
 0x2fd   :  { %v878_v8 = vadd.f32 %v2177_v28, %v877_v49  ;;  %v977_v62 = vmax.f32 %v875_v36, 0.0 }
 0x2fe   :  { %v980_v50 = vmax.f32 %v886_v7, 0.0 }
 0x2ff   :  { %v978_v53 = vmax.f32 %v878_v8, 0.0 }
 0x300   :  { %v1006_v42 = vpack.c.bf16 %v980_v50, %v979_v16 }
 0x301   :  { %v1005_v21 = vpack.c.bf16 %v978_v53, %v977_v62  ;;  %v1593_v51 = vpop.f32.mrb[44].mxu0 }
 0x302   :  { %v899_v9 = vadd.f32 %v1593_v51, %v2177_v28  ;;  %v890_v22 = vpop.f32.mrb[45].mxu0 }
 0x303   :  { %v891_v4 = vadd.f32 %v2177_v28, %v890_v22  ;;  %v1594_v23 = vpop.f32.mrb[46].mxu0  ;;  %1635 = vmatprep.mubr.bf16.mxu1 %v1005_v21 }
 0x304   :  { %v902_v24 = vadd.f32 %v1594_v23, %v2177_v28  ;;  %v893_v59 = vpop.f32.mrb[47].mxu0  ;;  %1636 = vmatmul.mubr.bf16.gmra.mrb[40].mxu1 %v1006_v42  ;;  %v983_v39 = vmax.f32 %v899_v9, 0.0 }
 0x305   :  { %v894_v25 = vadd.f32 %v2177_v28, %v893_v59  ;;  %v981_v10 = vmax.f32 %v891_v4, 0.0 }
 0x306   :  { %v984_v60 = vmax.f32 %v902_v24, 0.0 }
 0x307   :  { %v982_v29 = vmax.f32 %v894_v25, 0.0 }
 0x308   :  { %v1008_v52 = vpack.c.bf16 %v984_v60, %v983_v39 }
 0x309   :  { %v1007_v41 = vpack.c.bf16 %v982_v29, %v981_v10  ;;  %v1597_v61 = vpop.f32.mrb[48].mxu0 }
 0x30a   :  { %v915_v27 = vadd.f32 %v1597_v61, %v2177_v28  ;;  %v906_v45 = vpop.f32.mrb[49].mxu0 }
 0x30b   :  { %v907_v48 = vadd.f32 %v2177_v28, %v906_v45  ;;  %v1598_v46 = vpop.f32.mrb[50].mxu0  ;;  %1639 = vmatprep.mubr.bf16.mxu1 %v1007_v41 }
 0x30c   :  { %v918_v35 = vadd.f32 %v1598_v46, %v2177_v28  ;;  %v909_v36 = vpop.f32.mrb[51].mxu0  ;;  %1640 = vmatmul.mubr.bf16.gmra.mrb[44].mxu1 %v1008_v52  ;;  %v987_v7 = vmax.f32 %v915_v27, 0.0 }
 0x30d   :  { %v910_v47 = vadd.f32 %v2177_v28, %v909_v36  ;;  %v985_v8 = vmax.f32 %v907_v48, 0.0 }
 0x30e   :  { %v988_v49 = vmax.f32 %v918_v35, 0.0 }
 0x30f   :  { %v986_v16 = vmax.f32 %v910_v47, 0.0 }
 0x310   :  { %v1010_v50 = vpack.c.bf16 %v988_v49, %v987_v7 }
 0x311   :  { %v1009_v62 = vpack.c.bf16 %v986_v16, %v985_v8  ;;  %v1601_v53 = vpop.f32.mrb[52].mxu0 }
 0x312   :  { %v931_v42 = vadd.f32 %v1601_v53, %v2177_v28  ;;  %v922_v21 = vpop.f32.mrb[53].mxu0 }
 0x313   :  { %v923_v51 = vadd.f32 %v2177_v28, %v922_v21  ;;  %v1602_v9 = vpop.f32.mrb[54].mxu0  ;;  %1643 = vmatprep.mubr.bf16.mxu1 %v1009_v62 }
 0x314   :  { %v934_v22 = vadd.f32 %v1602_v9, %v2177_v28  ;;  %v925_v4 = vpop.f32.mrb[55].mxu0  ;;  %1644 = vmatmul.mubr.bf16.gmra.mrb[48].mxu1 %v1010_v50  ;;  %v991_v24 = vmax.f32 %v931_v42, 0.0 }
 0x315   :  { %v926_v23 = vadd.f32 %v2177_v28, %v925_v4  ;;  %v989_v25 = vmax.f32 %v923_v51, 0.0 }
 0x316   :  { %v992_v59 = vmax.f32 %v934_v22, 0.0 }
 0x317   :  { %v990_v39 = vmax.f32 %v926_v23, 0.0 }
 0x318   :  { %v1012_v60 = vpack.c.bf16 %v992_v59, %v991_v24 }
 0x319   :  { %v1011_v10 = vpack.c.bf16 %v990_v39, %v989_v25  ;;  %v1605_v29 = vpop.f32.mrb[56].mxu0  ;;  %v2214_v39 = vld [vmem:[%s2299_s4 + $0x1] ss:$0 sm:$0xff]  ;;  %s1800_s4 = smov [#allocation8]  }
 0x31a   :  { %v947_v52 = vadd.f32 %v1605_v29, %v2177_v28  ;;  %v938_v41 = vpop.f32.mrb[57].mxu0  ;;  %s1320_s12 = sshll.u32 %s1800_s4, 4  ;;  %s1321_s12 = int_to_ptr.vmem [resolvable:$true] %s1320_s12 }
 0x31b   :  { %v939_v61 = vadd.f32 %v2177_v28, %v938_v41  ;;  %v1606_v27 = vpop.f32.mrb[58].mxu0  ;;  %1647 = vmatprep.mubr.bf16.mxu1 %v1011_v10  ;;  %s1765_s13 = scalar_lea.vmem %s1321_s12, 4096  ;;  %p1770_p11 = scmp.lt.s32.totalorder %s1321_s12, %s1321_s12 }
 0x31c   :  { %v950_v45 = vadd.f32 %v1606_v27, %v2177_v28  ;;  %v941_v48 = vpop.f32.mrb[59].mxu0  ;;  %1648 = vmatmul.mubr.bf16.gmra.mrb[52].mxu1 %v1012_v60  ;;  %v995_v35 = vmax.f32 %v947_v52, 0.0  ;;  %p1766_p10 = scmp.ne.s32.totalorder %s1321_s12, %s1765_s13  ;;  %p1771_p12 = scmp.lt.s32.totalorder %s1765_s13, %s1765_s13 }
 0x31d   :  { %v942_v46 = vadd.f32 %v2177_v28, %v941_v48  ;;  %v993_v47 = vmax.f32 %v939_v61, 0.0 }
 0x31e   :  { %v996_v36 = vmax.f32 %v950_v45, 0.0  ;;  %p1772_p13 = por %p1771_p12, %p1770_p11 }
 0x31f   :  { %v994_v7 = vmax.f32 %v942_v46, 0.0 }
 0x320   :  { %v1014_v49 = vpack.c.bf16 %v996_v36, %v995_v35  ;;  %p1773_p0 = pnand %p1772_p13, %p1766_p10 }
 0x321   :  { %v1013_v8 = vpack.c.bf16 %v994_v7, %v993_v47  ;;  %v1609_v16 = vpop.f32.mrb[60].mxu0 }
 0x322   :  { %v963_v50 = vadd.f32 %v1609_v16, %v2177_v28  ;;  %v954_v62 = vpop.f32.mrb[61].mxu0 }
 0x323   :  { %v955_v53 = vadd.f32 %v2177_v28, %v954_v62  ;;  %v1610_v42 = vpop.f32.mrb[62].mxu0  ;;  %1651 = vmatprep.mubr.bf16.mxu1 %v1013_v8 }
 0x324   :  { %v966_v21 = vadd.f32 %v1610_v42, %v2177_v28  ;;  %v957_v51 = vpop.f32.mrb[63].mxu0  ;;  %1652 = vmatmul.mubr.bf16.gmra.mrb[56].mxu1 %v1014_v49  ;;  %v999_v22 = vmax.f32 %v963_v50, 0.0 }
 0x325   :  { %v958_v9 = vadd.f32 %v2177_v28, %v957_v51  ;;  %v997_v23 = vmax.f32 %v955_v53, 0.0 }
 0x326   :  { %v1000_v4 = vmax.f32 %v966_v21, 0.0 }
 0x327   :  { %v998_v24 = vmax.f32 %v958_v9, 0.0 }
 0x328   :  { %v1016_v59 = vpack.c.bf16 %v1000_v4, %v999_v22 }
 0x329   :  { %v1015_v25 = vpack.c.bf16 %v998_v24, %v997_v23 }
 0x32b   :  { %1655 = vmatprep.mubr.bf16.mxu1 %v1015_v25 }
 0x32c   :  { %1656 = vmatmul.mubr.bf16.gmra.mrb[60].mxu1 %v1016_v59 }
 0x3c7   :  { %v1629_v60 = vpop.f32.mrb[32].mxu1 }
 0x3c8   :  { %v1133_v10 = vadd.f32 %v1629_v60, %v2214_v39  ;;  %v1124_v29 = vpop.f32.mrb[33].mxu1 }
 0x3c9   :  { %v1125_v52 = vadd.f32 %v2214_v39, %v1124_v29  ;;  %v1630_v28 = vpop.f32.mrb[34].mxu1 }
 0x3ca   :  { %v1253_v41 = vadd.f32 %v1133_v10, %v2022_v3  ;;  %v1136_v61 = vadd.f32 %v1630_v28, %v2214_v39  ;;  %v1127_v27 = vpop.f32.mrb[35].mxu1 }
 0x3cb   :  { %v1251_v45 = vadd.f32 %v1125_v52, %v2018_v1  ;;  %v1128_v48 = vadd.f32 %v2214_v39, %v1127_v27 }
 0x3cc   :  { %1285 = vst [vmem:[#allocation8 + $0x10] sm:$0xff] %v1253_v41  ;;  %v1254_v46 = vadd.f32 %v1136_v61, %v2025_v6 }
 0x3cd   :  { %1283 = vst [vmem:[#allocation8] sm:$0xff] %v1251_v45  ;;  %v1252_v35 = vadd.f32 %v1128_v48, %v2028_v14 }
 0x3ce   :  { %1286 = vst [vmem:[#allocation8 + $0x18] sm:$0xff] %v1254_v46 }
 0x3cf   :  { %1284 = vst [vmem:[#allocation8 + $0x8] sm:$0xff] %v1252_v35  ;;  %v1633_v36 = vpop.f32.mrb[36].mxu1 }
 0x3d0   :  { %v1149_v47 = vadd.f32 %v1633_v36, %v2214_v39  ;;  %v1140_v7 = vpop.f32.mrb[37].mxu1 }
 0x3d1   :  { %v1141_v3 = vadd.f32 %v2214_v39, %v1140_v7  ;;  %v1634_v49 = vpop.f32.mrb[38].mxu1 }
 0x3d2   :  { %v1257_v8 = vadd.f32 %v1149_v47, %v2042_v37  ;;  %v1152_v1 = vadd.f32 %v1634_v49, %v2214_v39  ;;  %v1143_v16 = vpop.f32.mrb[39].mxu1 }
 0x3d3   :  { %v1255_v50 = vadd.f32 %v1141_v3, %v2038_v33  ;;  %v1144_v6 = vadd.f32 %v2214_v39, %v1143_v16 }
 0x3d4   :  { %1289 = vst [vmem:[#allocation8 + $0x30] sm:$0xff] %v1257_v8  ;;  %v1258_v14 = vadd.f32 %v1152_v1, %v2045_v38 }
 0x3d5   :  { %1287 = vst [vmem:[#allocation8 + $0x20] sm:$0xff] %v1255_v50  ;;  %v1256_v62 = vadd.f32 %v1144_v6, %v2048_v43 }
 0x3d6   :  { %1290 = vst [vmem:[#allocation8 + $0x38] sm:$0xff] %v1258_v14 }
 0x3d7   :  { %1288 = vst [vmem:[#allocation8 + $0x28] sm:$0xff] %v1256_v62  ;;  %v1637_v53 = vpop.f32.mrb[40].mxu1 }
 0x3d8   :  { %v1165_v42 = vadd.f32 %v1637_v53, %v2214_v39  ;;  %v1156_v21 = vpop.f32.mrb[41].mxu1 }
 0x3d9   :  { %v1157_v37 = vadd.f32 %v2214_v39, %v1156_v21  ;;  %v1638_v51 = vpop.f32.mrb[42].mxu1 }
 0x3da   :  { %v1261_v9 = vadd.f32 %v1165_v42, %v2062_v0  ;;  %v1168_v33 = vadd.f32 %v1638_v51, %v2214_v39  ;;  %v1159_v22 = vpop.f32.mrb[43].mxu1 }
 0x3db   :  { %v1259_v4 = vadd.f32 %v1157_v37, %v2058_v58  ;;  %v1160_v38 = vadd.f32 %v2214_v39, %v1159_v22 }
 0x3dc   :  { %1293 = vst [vmem:[#allocation8 + $0x50] sm:$0xff] %v1261_v9  ;;  %v1262_v43 = vadd.f32 %v1168_v33, %v2065_v2 }
 0x3dd   :  { %1291 = vst [vmem:[#allocation8 + $0x40] sm:$0xff] %v1259_v4  ;;  %v1260_v23 = vadd.f32 %v1160_v38, %v2068_v17 }
 0x3de   :  { %1294 = vst [vmem:[#allocation8 + $0x58] sm:$0xff] %v1262_v43 }
 0x3df   :  { %1292 = vst [vmem:[#allocation8 + $0x48] sm:$0xff] %v1260_v23  ;;  %v1641_v24 = vpop.f32.mrb[44].mxu1 }
 0x3e0   :  { %v1181_v59 = vadd.f32 %v1641_v24, %v2214_v39  ;;  %v1172_v25 = vpop.f32.mrb[45].mxu1 }
 0x3e1   :  { %v1173_v0 = vadd.f32 %v2214_v39, %v1172_v25  ;;  %v1642_v60 = vpop.f32.mrb[46].mxu1 }
 0x3e2   :  { %v1265_v10 = vadd.f32 %v1181_v59, %v2082_v32  ;;  %v1184_v58 = vadd.f32 %v1642_v60, %v2214_v39  ;;  %v1175_v29 = vpop.f32.mrb[47].mxu1 }
 0x3e3   :  { %v1263_v52 = vadd.f32 %v1173_v0, %v2078_v31  ;;  %v1176_v2 = vadd.f32 %v2214_v39, %v1175_v29 }
 0x3e4   :  { %1297 = vst [vmem:[#allocation8 + $0x70] sm:$0xff] %v1265_v10  ;;  %v1266_v17 = vadd.f32 %v1184_v58, %v2085_v34 }
 0x3e5   :  { %1295 = vst [vmem:[#allocation8 + $0x60] sm:$0xff] %v1263_v52  ;;  %v1264_v28 = vadd.f32 %v1176_v2, %v2088_v44 }
 0x3e6   :  { %1298 = vst [vmem:[#allocation8 + $0x78] sm:$0xff] %v1266_v17 }
 0x3e7   :  { %1296 = vst [vmem:[#allocation8 + $0x68] sm:$0xff] %v1264_v28  ;;  %v1645_v41 = vpop.f32.mrb[48].mxu1 }
 0x3e8   :  { %v1197_v61 = vadd.f32 %v1645_v41, %v2214_v39  ;;  %v1188_v27 = vpop.f32.mrb[49].mxu1 }
 0x3e9   :  { %v1189_v32 = vadd.f32 %v2214_v39, %v1188_v27  ;;  %v1646_v45 = vpop.f32.mrb[50].mxu1 }
 0x3ea   :  { %v1269_v48 = vadd.f32 %v1197_v61, %v2102_v56  ;;  %v1200_v31 = vadd.f32 %v1646_v45, %v2214_v39  ;;  %v1191_v46 = vpop.f32.mrb[51].mxu1 }
 0x3eb   :  { %v1267_v35 = vadd.f32 %v1189_v32, %v2098_v55  ;;  %v1192_v34 = vadd.f32 %v2214_v39, %v1191_v46 }
 0x3ec   :  { %1301 = vst [vmem:[#allocation8 + $0x90] sm:$0xff] %v1269_v48  ;;  %v1270_v44 = vadd.f32 %v1200_v31, %v2105_v63 }
 0x3ed   :  { %1299 = vst [vmem:[#allocation8 + $0x80] sm:$0xff] %v1267_v35  ;;  %v1268_v36 = vadd.f32 %v1192_v34, %v2108_v19 }
 0x3ee   :  { %1302 = vst [vmem:[#allocation8 + $0x98] sm:$0xff] %v1270_v44 }
 0x3ef   :  { %1300 = vst [vmem:[#allocation8 + $0x88] sm:$0xff] %v1268_v36  ;;  %v1649_v47 = vpop.f32.mrb[52].mxu1 }
 0x3f0   :  { %v1213_v7 = vadd.f32 %v1649_v47, %v2214_v39  ;;  %v1204_v3 = vpop.f32.mrb[53].mxu1 }
 0x3f1   :  { %v1205_v56 = vadd.f32 %v2214_v39, %v1204_v3  ;;  %v1650_v49 = vpop.f32.mrb[54].mxu1 }
 0x3f2   :  { %v1273_v8 = vadd.f32 %v1213_v7, %v2122_v12  ;;  %v1216_v55 = vadd.f32 %v1650_v49, %v2214_v39  ;;  %v1207_v1 = vpop.f32.mrb[55].mxu1 }
 0x3f3   :  { %v1271_v16 = vadd.f32 %v1205_v56, %v2118_v30  ;;  %v1208_v63 = vadd.f32 %v2214_v39, %v1207_v1 }
 0x3f4   :  { %1305 = vst [vmem:[#allocation8 + $0xb0] sm:$0xff] %v1273_v8  ;;  %v1274_v19 = vadd.f32 %v1216_v55, %v2125_v5 }
 0x3f5   :  { %1303 = vst [vmem:[#allocation8 + $0xa0] sm:$0xff] %v1271_v16  ;;  %v1272_v50 = vadd.f32 %v1208_v63, %v2128_v57 }
 0x3f6   :  { %1306 = vst [vmem:[#allocation8 + $0xb8] sm:$0xff] %v1274_v19 }
 0x3f7   :  { %1304 = vst [vmem:[#allocation8 + $0xa8] sm:$0xff] %v1272_v50  ;;  %v1653_v6 = vpop.f32.mrb[56].mxu1 }
 0x3f8   :  { %v1229_v14 = vadd.f32 %v1653_v6, %v2214_v39  ;;  %v1220_v62 = vpop.f32.mrb[57].mxu1 }
 0x3f9   :  { %v1221_v12 = vadd.f32 %v2214_v39, %v1220_v62  ;;  %v1654_v53 = vpop.f32.mrb[58].mxu1 }
 0x3fa   :  { %v1277_v42 = vadd.f32 %v1229_v14, %v2142_v54  ;;  %v1232_v30 = vadd.f32 %v1654_v53, %v2214_v39  ;;  %v1223_v21 = vpop.f32.mrb[59].mxu1 }
 0x3fb   :  { %v1275_v37 = vadd.f32 %v1221_v12, %v2138_v18  ;;  %v1224_v5 = vadd.f32 %v2214_v39, %v1223_v21 }
 0x3fc   :  { %1309 = vst [vmem:[#allocation8 + $0xd0] sm:$0xff] %v1277_v42  ;;  %v1278_v57 = vadd.f32 %v1232_v30, %v2145_v15 }
 0x3fd   :  { %1307 = vst [vmem:[#allocation8 + $0xc0] sm:$0xff] %v1275_v37  ;;  %v1276_v51 = vadd.f32 %v1224_v5, %v2148_v20 }
 0x3fe   :  { %1310 = vst [vmem:[#allocation8 + $0xd8] sm:$0xff] %v1278_v57 }
 0x3ff   :  { %1308 = vst [vmem:[#allocation8 + $0xc8] sm:$0xff] %v1276_v51  ;;  %v1657_v9 = vpop.f32.mrb[60].mxu1 }
 0x400   :  { %v1245_v33 = vadd.f32 %v1657_v9, %v2214_v39  ;;  %v1236_v22 = vpop.f32.mrb[61].mxu1 }
 0x401   :  { %v1237_v54 = vadd.f32 %v2214_v39, %v1236_v22  ;;  %v1658_v4 = vpop.f32.mrb[62].mxu1 }
 0x402   :  { %v1281_v38 = vadd.f32 %v1245_v33, %v2162_v11  ;;  %v1248_v18 = vadd.f32 %v1658_v4, %v2214_v39  ;;  %v1239_v43 = vpop.f32.mrb[63].mxu1 }
 0x403   :  { %v1279_v15 = vadd.f32 %v1237_v54, %v2158_v40  ;;  %v1240_v20 = vadd.f32 %v2214_v39, %v1239_v43 }
 0x404   :  { %1313 = vst [vmem:[#allocation8 + $0xf0] sm:$0xff] %v1281_v38  ;;  %v1282_v23 = vadd.f32 %v1248_v18, %v2165_v26 }
 0x405   :  { %1311 = vst [vmem:[#allocation8 + $0xe0] sm:$0xff] %v1279_v15  ;;  %v1280_v24 = vadd.f32 %v1240_v20, %v2168_v13 }
 0x406   :  { %1314 = vst [vmem:[#allocation8 + $0xf8] sm:$0xff] %v1282_v23 }
 0x407   :  { %1312 = vst [vmem:[#allocation8 + $0xe8] sm:$0xff] %v1280_v24 }
 0x408   :  { %1776 = shalt.err (!%p1773_p0)
}
 0x409   :  { %s1777_s16 = scalar_lea.hbm %s2300_s5, 4096 }
 0x40a   :  { %p1778_p1 = scmp.ne.s32.totalorder %s2300_s5, %s1777_s16  ;;  %p1781_p2 = scmp.lt.u32.totalorder %s1777_s16, %s2300_s5 }
 0x40c   :  { %p1783_p3 = pnand %p1781_p2, %p1778_p1 }
 0x40e   :  { %1786 = shalt.err (!%p1783_p3)
}
 0x40f   :  { %1326 = dma.vmem_to_hbm [thread:$0]  %s1321_s12, 4096, %s2300_s5, [#allocation4], %s1797_s1, %s1797_s1, %s1798_s17  }
 0x410   :  { %1791 = dma.done.wait [#allocation4], 4096  }
 0x411   :  { %1792 = vsyncadd [#allocation4], 4294963200 }
 0x412   :  { %1330 = vsyncpa [#allocation3], 1 }
 0x413   :  { %1331 = vsyncpa [#allocation6], 1 }
 0x414   :  { %1332 = vsyncpa [#allocation4], 1 }

</bundles_post_ra>
